<compile_context>
chip_gen: v5e
topology: v5e:2x2
jax: 0.10.0
libtpu: 0.0.40
codegen_flags: <defaults>
</compile_context>

<pallas_src>
import functools

import jax
import jax.numpy as jnp
from jax import lax
from jax.experimental import pallas as pl
from jax.experimental.pallas import tpu as pltpu

# ----------------------------- config ------------------------------------ #
MAX_LEN = 32
EPS = 1e-8
NEG_INF = -1e30          # finite "-inf": avoids NaN for all-masked rows

B = 2           # batch
S = 8           # source sequence length
T = 8           # target sequence length
VOCAB = 64
EMBED = 32      # embed_dim (yencoder/zencoder = word_avg -> out size EMBED)
MHSIZE = 32     # mlp hidden size
YSIZE = 16      # semantic latent size
ZSIZE = 16      # syntax latent size
N_LAYER = 1     # mlp layers

LRATIO = 1.0
PLRATIO = 1.0
PRATIO = 1.0

assert S == T, "stacked pos-loss/decode kernels assume equal src/tgt lengths"
assert N_LAYER == 1, "fused kernels assume 2-layer (n_layer=1) MLPs"

NB = 2 * B        # two sentences stacked along batch
NENC = NB * S     # flattened token rows for encoder / pos-loss group
NPAIR = NB * T    # flattened token rows per decode variant-pair

_VMEM = pl.BlockSpec(memory_space=pltpu.MemorySpace.VMEM)


# ----------------------------- kernels ------------------------------------ #
def _encoder_kernel(toky_ref, tokz_ref, m_ref, ytab_ref, ztab_ref,
                    wy0_ref, by0_ref, wy1_ref, by1_ref,
                    wz0_ref, bz0_ref, wz1_ref, bz1_ref,
                    gn_ref, yn_ref,
                    sem_ref, syn_ref, kl_ref):
    """word_avg(x2) + fused mean/logvar heads + sampling + KLs, both sentences."""
    f32 = jnp.float32
    vio = lax.broadcasted_iota(jnp.int32, (NENC, VOCAB), 1)
    ohy = (toky_ref[...] == vio).astype(f32)                       # (NENC, V)
    ohz = (tokz_ref[...] == vio).astype(f32)
    m = m_ref[...]                                                 # (NB, NENC) = mask/den selector
    # masked word-average as two chained matmuls on the MXU
    yvecs = jnp.dot(jnp.dot(m, ohy, preferred_element_type=f32),
                    ytab_ref[...], preferred_element_type=f32)     # (NB, EMBED)
    zvecs = jnp.dot(jnp.dot(m, ohz, preferred_element_type=f32),
                    ztab_ref[...], preferred_element_type=f32)

    # fused mean1 + logvar1 heads (concat layer0, block-diag layer1)
    hy = jnp.maximum(jnp.dot(yvecs, wy0_ref[...], preferred_element_type=f32)
                     + by0_ref[...], 0.0)
    heads_y = jnp.dot(hy, wy1_ref[...], preferred_element_type=f32) + by1_ref[...]
    mean = heads_y[:, :YSIZE]
    mean = mean / jnp.sqrt(jnp.sum(mean * mean, axis=-1, keepdims=True))
    kappa = jnp.log(1.0 + jnp.exp(heads_y[:, YSIZE:YSIZE + 1])) + 1.0   # softplus + 1

    # fused mean2 + logvar2 heads
    hz = jnp.maximum(jnp.dot(zvecs, wz0_ref[...], preferred_element_type=f32)
                     + bz0_ref[...], 0.0)
    heads_z = jnp.dot(hz, wz1_ref[...], preferred_element_type=f32) + bz1_ref[...]
    mu = heads_z[:, :ZSIZE]
    lv = heads_z[:, ZSIZE:]

    # reparameterized gaussian sample (syntax)
    syn_ref[...] = mu + jnp.exp(0.5 * lv) * gn_ref[...]
    # TODO(synk): exact VonMisesFisher rsample (rejection sampling + Bessel fns) has no clean
    # Pallas equivalent; approximated by a tangent perturbation reprojected to the unit sphere.
    v = mean + yn_ref[...] / jnp.sqrt(kappa)
    sem_ref[...] = v / jnp.sqrt(jnp.sum(v * v, axis=-1, keepdims=True))

    gkl = jnp.sum(-0.5 * (1.0 + lv - mu * mu - jnp.exp(lv))) / B
    # TODO(synk): exact vMF KL needs modified Bessel functions; surrogate mean(kappa - 1).
    vkl = jnp.sum(kappa - 1.0) / B
    lane = lax.broadcasted_iota(jnp.int32, (1, 128), 1)
    kl_ref[...] = jnp.where(lane == 0, vkl, 0.0) + jnp.where(lane == 1, gkl, 0.0)


def _decode_kernel(tgt_ref, msk_ref, gid_ref, exp_ref, sem_ref, syn_ref, tab_ref,
                   w0e_ref, w0y_ref, w0z_ref, b0_ref, w1_ref, b1_ref,
                   wout_ref, bout_ref, out_ref):
    """One decode variant-pair (2 variants of B*T tokens each), int-label CE."""
    # TODO(synk): original decoder is an LSTM (code not provided); replaced by a
    # conditional MLP decoder with masked token-level cross entropy.
    f32 = jnp.float32
    vio = lax.broadcasted_iota(jnp.int32, (NPAIR, VOCAB), 1)
    oh = (tgt_ref[...] == vio).astype(f32)                               # (NPAIR, V)
    temb = jnp.dot(oh, tab_ref[...], preferred_element_type=f32)         # (NPAIR, E)
    # first hidden layer split by input rows: temb@We + sem@Wy + syn@Wz + b0
    hyz = (jnp.dot(sem_ref[...], w0y_ref[...], preferred_element_type=f32)
           + jnp.dot(syn_ref[...], w0z_ref[...], preferred_element_type=f32)
           + b0_ref[...])                                                # (NB, MH)
    hyz_rows = jnp.dot(exp_ref[...], hyz, preferred_element_type=f32)    # broadcast over T
    h = jnp.maximum(jnp.dot(temb, w0e_ref[...], preferred_element_type=f32)
                    + hyz_rows, 0.0)
    h2 = jnp.dot(h, w1_ref[...], preferred_element_type=f32) + b1_ref[...]
    logits = jnp.dot(h2, wout_ref[...], preferred_element_type=f32) + bout_ref[...]

    mx = jnp.max(logits, axis=-1, keepdims=True)
    lse = jnp.log(jnp.sum(jnp.exp(logits - mx), axis=-1, keepdims=True)) + mx
    picked = jnp.sum(logits * oh, axis=-1, keepdims=True)                # logits[r, label]
    nll = lse - picked                                                   # (NPAIR, 1)

    msk = msk_ref[...]
    gid = gid_ref[...]
    lane = lax.broadcasted_iota(jnp.int32, (1, 128), 1)
    row = jnp.zeros((1, 128), f32)
    for v in range(2):                                                   # 2 variants per pair
        sel = gid == v
        num = jnp.sum(jnp.where(sel, nll * msk, 0.0))
        den = jnp.sum(jnp.where(sel, msk, 0.0))
        row = row + jnp.where(lane == v, num / den, 0.0)
    out_ref[...] = row


def _pos_loss_kernel(tok_ref, qw_ref, km_ref, syn_ref, tab_ref,
                     we_ref, wz_ref, b0_ref, w1_ref, b1_ref,
                     exp_ref, dsel_ref, out_ref):
    """One pos-loss group (enc or dec): 2 variants, MLP + masked softmax diag."""
    f32 = jnp.float32
    vio = lax.broadcasted_iota(jnp.int32, (NENC, VOCAB), 1)
    oh = (tok_ref[...] == vio).astype(f32)                               # (NENC, V)
    emb = jnp.dot(oh, tab_ref[...], preferred_element_type=f32)          # (NENC, E)
    hsyn = jnp.dot(syn_ref[...], wz_ref[...], preferred_element_type=f32) + b0_ref[...]
    hsyn_rows = jnp.dot(exp_ref[...], hsyn, preferred_element_type=f32)  # broadcast over S
    h = jnp.maximum(jnp.dot(emb, we_ref[...], preferred_element_type=f32)
                    + hsyn_rows, 0.0)
    logits = jnp.dot(h, w1_ref[...], preferred_element_type=f32) + b1_ref[...]  # (NENC, MAX_LEN)

    km_rows = jnp.dot(exp_ref[...], km_ref[...], preferred_element_type=f32)    # key mask per row
    masked = jnp.where(km_rows > 0.5, logits, NEG_INF)
    mx = jnp.max(masked, axis=-1, keepdims=True)
    lse = jnp.log(jnp.sum(jnp.exp(masked - mx), axis=-1, keepdims=True)) + mx
    diag = jnp.sum(jnp.where(dsel_ref[...] > 0.5, masked, 0.0),
                   axis=-1, keepdims=True)                               # masked[b,s,s]
    p = jnp.exp(diag - lse)                                              # softmax prob at diag
    ploss_g = jnp.sum(-jnp.log(p + EPS) * qw_ref[...]) / B               # mean over both variants
    lane = lax.broadcasted_iota(jnp.int32, (1, 128), 1)
    out_ref[...] = jnp.where(lane == 0, ploss_g, 0.0)


# ----------------------------- pallas wrappers ----------------------------- #
def _encode(toky, tokz, m_sel, p, gnoise, ynoise):
    args = (toky, tokz, m_sel, p["ytable"], p["ztable"],
            p["wy0"], p["by0"], p["wy1"], p["by1"],
            p["wz0"], p["bz0"], p["wz1"], p["bz1"], gnoise, ynoise)
    out_shape = (jax.ShapeDtypeStruct((NB, YSIZE), jnp.float32),
                 jax.ShapeDtypeStruct((NB, ZSIZE), jnp.float32),
                 jax.ShapeDtypeStruct((1, 128), jnp.float32))
    return pl.pallas_call(_encoder_kernel, out_shape=out_shape,
                          in_specs=[_VMEM] * len(args),
                          out_specs=(_VMEM, _VMEM, _VMEM))(*args)


def _decode(tgt_pair, msk_pair, sem_pair, syn_pair, p):
    lead3 = lambda g: (g, 0, 0)
    fixed2 = lambda g: (0, 0)
    in_specs = [
        pl.BlockSpec((None, NPAIR, 1), lead3),          # tgt ids
        pl.BlockSpec((None, NPAIR, 1), lead3),          # tgt mask
        pl.BlockSpec((NPAIR, 1), fixed2),               # variant id within pair (const)
        pl.BlockSpec((NPAIR, NB), fixed2),              # row-expand selector (const)
        pl.BlockSpec((None, NB, YSIZE), lead3),         # semantic latents
        pl.BlockSpec((None, NB, ZSIZE), lead3),         # syntax latents
        pl.BlockSpec((VOCAB, EMBED), fixed2),           # decoder embedding table
        pl.BlockSpec((EMBED, MHSIZE), fixed2),          # W0 (embed rows)
        pl.BlockSpec((YSIZE, MHSIZE), fixed2),          # W0 (semantic rows)
        pl.BlockSpec((ZSIZE, MHSIZE), fixed2),          # W0 (syntax rows)
        pl.BlockSpec((1, MHSIZE), fixed2),              # b0
        pl.BlockSpec((MHSIZE, MHSIZE), fixed2),         # W1
        pl.BlockSpec((1, MHSIZE), fixed2),              # b1
        pl.BlockSpec((MHSIZE, VOCAB), fixed2),          # Wout
        pl.BlockSpec((1, VOCAB), fixed2),               # bout
    ]
    return pl.pallas_call(
        _decode_kernel,
        out_shape=jax.ShapeDtypeStruct((2, 1, 128), jnp.float32),
        grid=(2,),
        in_specs=in_specs,
        out_specs=pl.BlockSpec((None, 1, 128), lead3),
        compiler_params=pltpu.CompilerParams(dimension_semantics=("parallel",)),
    )(tgt_pair, msk_pair, p["dec_gid"], p["dec_expand"], sem_pair, syn_pair,
      p["dtable"], p["dec_w0e"], p["dec_w0y"], p["dec_w0z"], p["dec_b0"],
      p["dec_w1"], p["dec_b1"], p["dec_wout"], p["dec_bout"])


def _pos(tok_g, qw_g, km_g, syn_g, p):
    lead3 = lambda g: (g, 0, 0)
    fixed2 = lambda g: (0, 0)
    in_specs = [
        pl.BlockSpec((None, NENC, 1), lead3),           # token ids
        pl.BlockSpec((None, NENC, 1), lead3),           # query weights mask/den
        pl.BlockSpec((None, NB, MAX_LEN), lead3),       # key mask (padded to MAX_LEN)
        pl.BlockSpec((None, NB, ZSIZE), lead3),         # syntax latents
        pl.BlockSpec((None, VOCAB, EMBED), lead3),      # embedding table (z / dec)
        pl.BlockSpec((None, EMBED, MHSIZE), lead3),     # W0 (embed rows)
        pl.BlockSpec((None, ZSIZE, MHSIZE), lead3),     # W0 (syntax rows)
        pl.BlockSpec((None, 1, MHSIZE), lead3),         # b0
        pl.BlockSpec((None, MHSIZE, MAX_LEN), lead3),   # W1
        pl.BlockSpec((None, 1, MAX_LEN), lead3),        # b1
        pl.BlockSpec((NENC, NB), fixed2),               # row-expand selector (const)
        pl.BlockSpec((NENC, MAX_LEN), fixed2),          # diagonal selector (const)
    ]
    return pl.pallas_call(
        _pos_loss_kernel,
        out_shape=jax.ShapeDtypeStruct((2, 1, 128), jnp.float32),
        grid=(2,),
        in_specs=in_specs,
        out_specs=pl.BlockSpec((None, 1, 128), lead3),
        compiler_params=pltpu.CompilerParams(dimension_semantics=("parallel",)),
    )(tok_g, qw_g, km_g, syn_g, p["pos_tab"], p["pos_we"], p["pos_wz"],
      p["pos_b0"], p["pos_w1"], p["pos_b1"], p["pos_expand"], p["pos_dsel"])


# ----------------------------- forward ------------------------------------ #
def vgvae_forward(p, key, sent1, sent_repl1, mask1, sent2, sent_repl2, mask2,
                  tgt1, tgt_mask1, tgt2, tgt_mask2, vtemp, gtemp):
    # ---- encoder stage: both sentences stacked into one kernel call ----
    toky = jnp.concatenate([sent1, sent2], 0).reshape(NENC, 1)
    tokz = jnp.concatenate([sent_repl1, sent_repl2], 0).reshape(NENC, 1)
    mask = jnp.concatenate([mask1, mask2], 0)                         # (NB, S)
    den = jnp.sum(mask, axis=1, keepdims=True)
    m_sel = p["enc_sel"] * mask.reshape(1, NENC) / den                # masked-mean operator

    k1, k2 = jax.random.split(key)
    gnoise = jax.random.normal(k1, (NB, ZSIZE), jnp.float32)
    ynoise = jax.random.normal(k2, (NB, YSIZE), jnp.float32)

    sem, syn, klrow = _encode(toky, tokz, m_sel, p, gnoise, ynoise)
    sem1, sem2 = sem[:B], sem[B:]

    # ---- decode stage: 4 variants = 2 pairs (rec, para), one kernel call ----
    tgt_cat = jnp.concatenate([tgt1, tgt2], 0).reshape(NPAIR, 1)
    tmask2d = jnp.concatenate([tgt_mask1, tgt_mask2], 0)              # (NB, T)
    tmask_cat = tmask2d.reshape(NPAIR, 1)
    tgt_pair = jnp.stack([tgt_cat, tgt_cat], 0)
    msk_pair = jnp.stack([tmask_cat, tmask_cat], 0)
    sem_pair = jnp.stack([sem, jnp.concatenate([sem2, sem1], 0)], 0)  # rec / para pairs
    syn_pair = jnp.stack([syn, syn], 0)
    llrow = _decode(tgt_pair, msk_pair, sem_pair, syn_pair, p)
    rec_logloss = llrow[0, 0, 0] + llrow[0, 0, 1]
    para_logloss = llrow[1, 0, 0] + llrow[1, 0, 1]

    # ---- position losses: group 0 = encoder side, group 1 = decoder side ----
    tok_enc = jnp.concatenate([sent_repl1, sent_repl2], 0)
    tok_dec = jnp.concatenate([tgt1, tgt2], 0)
    tok_g = jnp.stack([tok_enc, tok_dec], 0).reshape(2, NENC, 1)
    tden = jnp.sum(tmask2d, axis=1, keepdims=True)
    qw_g = jnp.stack([(mask / den).reshape(NENC, 1),
                      (tmask2d / tden).reshape(NENC, 1)], 0)
    pad = jnp.zeros((NB, MAX_LEN - S), jnp.float32)
    km_g = jnp.stack([jnp.concatenate([mask, pad], 1),
                      jnp.concatenate([tmask2d, pad], 1)], 0)
    syn_g = jnp.stack([syn, syn], 0)
    prow = _pos(tok_g, qw_g, km_g, syn_g, p)
    ploss = prow[0, 0, 0] + prow[1, 0, 0]

    # ---- final scalar combination (tiny XLA glue) ----
    vkl = klrow[0, 0]
    gkl = klrow[0, 1]
    loss = (LRATIO * rec_logloss + PLRATIO * para_logloss
            + vtemp * vkl + gtemp * gkl + PRATIO * ploss)
    return loss, vkl, gkl, rec_logloss, para_logloss, ploss


# ----------------------------- params ------------------------------------- #
def init_mlp(key, in_dim, hidden, out_dim, n_layer):
    dims = [in_dim] + [hidden] * n_layer + [out_dim]
    ks = jax.random.split(key, len(dims) - 1)
    layers = []
    for i in range(len(dims) - 1):
        w = 0.1 * jax.random.normal(ks[i], (dims[i], dims[i + 1]), jnp.float32)
        b = jnp.zeros((1, dims[i + 1]), jnp.float32)
        layers.append((w, b))
    return layers


def init_params(key):
    ks = jax.random.split(key, 12)
    return {
        "yembed": 0.1 * jax.random.normal(ks[0], (VOCAB, EMBED), jnp.float32),
        "zembed": 0.1 * jax.random.normal(ks[1], (VOCAB, EMBED), jnp.float32),
        "dec_embed": 0.1 * jax.random.normal(ks[2], (VOCAB, EMBED), jnp.float32),
        "mean1": init_mlp(ks[3], EMBED, MHSIZE, YSIZE, N_LAYER),
        "logvar1": init_mlp(ks[4], EMBED, MHSIZE, 1, N_LAYER),
        "mean2": init_mlp(ks[5], EMBED, MHSIZE, ZSIZE, N_LAYER),
        "logvar2": init_mlp(ks[6], EMBED, MHSIZE, ZSIZE, N_LAYER),
        "enc_pos": init_mlp(ks[7], ZSIZE + EMBED, MHSIZE, MAX_LEN, N_LAYER),
        "dec_pos": init_mlp(ks[8], ZSIZE + EMBED, MHSIZE, MAX_LEN, N_LAYER),
        "dec_hidden": init_mlp(ks[9], EMBED + YSIZE + ZSIZE, MHSIZE, MHSIZE, N_LAYER),
        "dec_out_w": 0.1 * jax.random.normal(ks[10], (MHSIZE, VOCAB), jnp.float32),
        "dec_out_b": jnp.zeros((1, VOCAB), jnp.float32),
    }


def _fuse_heads(mlp_a, mlp_b):
    # two 2-layer MLPs that consume the same activation: concat layer0, block-diag layer1
    (wa0, ba0), (wa1, ba1) = mlp_a
    (wb0, bb0), (wb1, bb1) = mlp_b
    w0 = jnp.concatenate([wa0, wb0], axis=1)
    b0 = jnp.concatenate([ba0, bb0], axis=1)
    ha, hb = wa1.shape[0], wb1.shape[0]
    da, db = wa1.shape[1], wb1.shape[1]
    w1 = jnp.zeros((ha + hb, da + db), jnp.float32)
    w1 = w1.at[:ha, :da].set(wa1).at[ha:, da:].set(wb1)
    b1 = jnp.concatenate([ba1, bb1], axis=1)
    return w0, b0, w1, b1


def prepare_params(params):
    wy0, by0, wy1, by1 = _fuse_heads(params["mean1"], params["logvar1"])
    wz0, bz0, wz1, bz1 = _fuse_heads(params["mean2"], params["logvar2"])
    (dw0, db0), (dw1, db1) = params["dec_hidden"]
    (ew0, eb0), (ew1, eb1) = params["enc_pos"]
    (pw0, pb0), (pw1, pb1) = params["dec_pos"]

    return {
        "ytable": params["yembed"], "ztable": params["zembed"], "dtable": params["dec_embed"],
        "wy0": wy0, "by0": by0, "wy1": wy1, "by1": by1,
        "wz0": wz0, "bz0": bz0, "wz1": wz1, "bz1": bz1,
        # decoder weights (first layer pre-split by input rows: embed / semantic / syntax)
        "dec_w0e": dw0[:EMBED], "dec_w0y": dw0[EMBED:EMBED + YSIZE],
        "dec_w0z": dw0[EMBED + YSIZE:], "dec_b0": db0, "dec_w1": dw1, "dec_b1": db1,
        "dec_wout": params["dec_out_w"], "dec_bout": params["dec_out_b"],
        "dec_gid": (jnp.arange(NPAIR)[:, None] // (B * T)).astype(jnp.int32),
        "dec_expand": (jnp.arange(NPAIR)[:, None] // T
                       == jnp.arange(NB)[None, :]).astype(jnp.float32),
        # pos-loss MLPs stacked: group 0 = enc_pos (zembed), group 1 = dec_pos (dec_embed)
        "pos_tab": jnp.stack([params["zembed"], params["dec_embed"]], 0),
        "pos_we": jnp.stack([ew0[:EMBED], pw0[:EMBED]], 0),
        "pos_wz": jnp.stack([ew0[EMBED:], pw0[EMBED:]], 0),
        "pos_b0": jnp.stack([eb0, pb0], 0),
        "pos_w1": jnp.stack([ew1, pw1], 0),
        "pos_b1": jnp.stack([eb1, pb1], 0),
        "pos_expand": (jnp.arange(NENC)[:, None] // S
                       == jnp.arange(NB)[None, :]).astype(jnp.float32),
        "pos_dsel": (jnp.arange(MAX_LEN)[None, :]
                     == (jnp.arange(NENC) % S)[:, None]).astype(jnp.float32),
        # masked-average selector (block structure; mask values folded in at runtime)
        "enc_sel": (jnp.arange(NB)[:, None]
                    == jnp.arange(NENC)[None, :] // S).astype(jnp.float32),
    }


def make_mask(lengths, slen):
    pos = jnp.arange(slen)[None, :]
    return (pos < jnp.asarray(lengths)[:, None]).astype(jnp.float32)


# ----------------------------- main ---------------------------------------- #
if __name__ == "__main__":
    root = jax.random.PRNGKey(0)
    kp, kd, kn = jax.random.split(root, 3)
    params = prepare_params(init_params(kp))

    dks = jax.random.split(kd, 6)
    sent1 = jax.random.randint(dks[0], (B, S), 0, VOCAB, jnp.int32)
    sent_repl1 = jax.random.randint(dks[1], (B, S), 0, VOCAB, jnp.int32)
    sent2 = jax.random.randint(dks[2], (B, S), 0, VOCAB, jnp.int32)
    sent_repl2 = jax.random.randint(dks[3], (B, S), 0, VOCAB, jnp.int32)
    tgt1 = jax.random.randint(dks[4], (B, T), 0, VOCAB, jnp.int32)
    tgt2 = jax.random.randint(dks[5], (B, T), 0, VOCAB, jnp.int32)
    mask1 = make_mask([S, 5], S)
    mask2 = make_mask([6, S], S)
    tgt_mask1 = make_mask([T, 6], T)
    tgt_mask2 = make_mask([7, T], T)

    fwd = jax.jit(functools.partial(vgvae_forward, params))
    out = fwd(kn, sent1, sent_repl1, mask1, sent2, sent_repl2, mask2,
              tgt1, tgt_mask1, tgt2, tgt_mask2, 1.0, 1.0)
    out = jax.block_until_ready(out)
    vals = jnp.asarray([float(x) for x in out])
    assert bool(jnp.all(jnp.isfinite(vals)))
    print("KERNEL_OK")
</pallas_src>

<mosaic_0001>
module attributes {stable_mosaic.version = 11 : i64} {
  func.func @_encoder_kernel(%arg0: memref<32x1xi32, #tpu.memory_space<vmem>>, %arg1: memref<32x1xi32, #tpu.memory_space<vmem>>, %arg2: memref<4x32xf32, #tpu.memory_space<vmem>>, %arg3: memref<64x32xf32, #tpu.memory_space<vmem>>, %arg4: memref<64x32xf32, #tpu.memory_space<vmem>>, %arg5: memref<32x64xf32, #tpu.memory_space<vmem>>, %arg6: memref<1x64xf32, #tpu.memory_space<vmem>>, %arg7: memref<64x17xf32, #tpu.memory_space<vmem>>, %arg8: memref<1x17xf32, #tpu.memory_space<vmem>>, %arg9: memref<32x64xf32, #tpu.memory_space<vmem>>, %arg10: memref<1x64xf32, #tpu.memory_space<vmem>>, %arg11: memref<64x32xf32, #tpu.memory_space<vmem>>, %arg12: memref<1x32xf32, #tpu.memory_space<vmem>>, %arg13: memref<4x16xf32, #tpu.memory_space<vmem>>, %arg14: memref<4x16xf32, #tpu.memory_space<vmem>>, %arg15: memref<4x16xf32, #tpu.memory_space<vmem>>, %arg16: memref<4x16xf32, #tpu.memory_space<vmem>>, %arg17: memref<1x128xf32, #tpu.memory_space<vmem>>) attributes {dimension_semantics = [], scalar_prefetch = 0 : i64, scratch_operands = 0 : i64, tpu.core_type = #tpu.core_type<tc>} {
    %0 = tpu.iota {dimensions = array<i32: 1>} : vector<32x64xi32>
    %c0 = arith.constant 0 : index
    %c0_0 = arith.constant 0 : index
    %1 = vector.load %arg0[%c0, %c0_0] : memref<32x1xi32, #tpu.memory_space<vmem>>, vector<32x1xi32>
    %2 = vector.broadcast %1 : vector<32x1xi32> to vector<32x64xi32>
    %3 = arith.cmpi eq, %2, %0 : vector<32x64xi32>
    %4 = arith.extui %3 : vector<32x64xi1> to vector<32x64xi32>
    %5 = arith.sitofp %4 : vector<32x64xi32> to vector<32x64xf32>
    %c0_1 = arith.constant 0 : index
    %c0_2 = arith.constant 0 : index
    %6 = vector.load %arg1[%c0_1, %c0_2] : memref<32x1xi32, #tpu.memory_space<vmem>>, vector<32x1xi32>
    %7 = vector.broadcast %6 : vector<32x1xi32> to vector<32x64xi32>
    %8 = arith.cmpi eq, %7, %0 : vector<32x64xi32>
    %9 = arith.extui %8 : vector<32x64xi1> to vector<32x64xi32>
    %10 = arith.sitofp %9 : vector<32x64xi32> to vector<32x64xf32>
    %c0_3 = arith.constant 0 : index
    %c0_4 = arith.constant 0 : index
    %11 = vector.load %arg2[%c0_3, %c0_4] : memref<4x32xf32, #tpu.memory_space<vmem>>, vector<4x32xf32>
    %cst = arith.constant dense<0.000000e+00> : vector<4x64xf32>
    %12 = tpu.matmul %11, %5, %cst {dimension_numbers = #tpu.dot_dimension_numbers<[1], [0], [0], [1], [0, 0, 1, 1], [], []>} : vector<4x32xf32>, vector<32x64xf32>, vector<4x64xf32> -> vector<4x64xf32>
    %c0_5 = arith.constant 0 : index
    %c0_6 = arith.constant 0 : index
    %13 = vector.load %arg3[%c0_5, %c0_6] : memref<64x32xf32, #tpu.memory_space<vmem>>, vector<64x32xf32>
    %cst_7 = arith.constant dense<0.000000e+00> : vector<4x32xf32>
    %14 = tpu.matmul %12, %13, %cst_7 {dimension_numbers = #tpu.dot_dimension_numbers<[1], [0], [0], [1], [0, 0, 1, 1], [], []>} : vector<4x64xf32>, vector<64x32xf32>, vector<4x32xf32> -> vector<4x32xf32>
    %cst_8 = arith.constant dense<0.000000e+00> : vector<4x64xf32>
    %15 = tpu.matmul %11, %10, %cst_8 {dimension_numbers = #tpu.dot_dimension_numbers<[1], [0], [0], [1], [0, 0, 1, 1], [], []>} : vector<4x32xf32>, vector<32x64xf32>, vector<4x64xf32> -> vector<4x64xf32>
    %c0_9 = arith.constant 0 : index
    %c0_10 = arith.constant 0 : index
    %16 = vector.load %arg4[%c0_9, %c0_10] : memref<64x32xf32, #tpu.memory_space<vmem>>, vector<64x32xf32>
    %cst_11 = arith.constant dense<0.000000e+00> : vector<4x32xf32>
    %17 = tpu.matmul %15, %16, %cst_11 {dimension_numbers = #tpu.dot_dimension_numbers<[1], [0], [0], [1], [0, 0, 1, 1], [], []>} : vector<4x64xf32>, vector<64x32xf32>, vector<4x32xf32> -> vector<4x32xf32>
    %c0_12 = arith.constant 0 : index
    %c0_13 = arith.constant 0 : index
    %18 = vector.load %arg5[%c0_12, %c0_13] : memref<32x64xf32, #tpu.memory_space<vmem>>, vector<32x64xf32>
    %cst_14 = arith.constant dense<0.000000e+00> : vector<4x64xf32>
    %19 = tpu.matmul %14, %18, %cst_14 {dimension_numbers = #tpu.dot_dimension_numbers<[1], [0], [0], [1], [0, 0, 1, 1], [], []>} : vector<4x32xf32>, vector<32x64xf32>, vector<4x64xf32> -> vector<4x64xf32>
    %c0_15 = arith.constant 0 : index
    %c0_16 = arith.constant 0 : index
    %20 = vector.load %arg6[%c0_15, %c0_16] : memref<1x64xf32, #tpu.memory_space<vmem>>, vector<1x64xf32>
    %21 = vector.broadcast %20 : vector<1x64xf32> to vector<4x64xf32>
    %22 = arith.addf %19, %21 : vector<4x64xf32>
    %cst_17 = arith.constant 0.000000e+00 : f32
    %23 = vector.broadcast %cst_17 : f32 to vector<4x64xf32>
    %24 = arith.maximumf %22, %23 : vector<4x64xf32>
    %c0_18 = arith.constant 0 : index
    %c0_19 = arith.constant 0 : index
    %25 = vector.load %arg7[%c0_18, %c0_19] : memref<64x17xf32, #tpu.memory_space<vmem>>, vector<64x17xf32>
    %cst_20 = arith.constant dense<0.000000e+00> : vector<4x17xf32>
    %26 = tpu.matmul %24, %25, %cst_20 {dimension_numbers = #tpu.dot_dimension_numbers<[1], [0], [0], [1], [0, 0, 1, 1], [], []>} : vector<4x64xf32>, vector<64x17xf32>, vector<4x17xf32> -> vector<4x17xf32>
    %c0_21 = arith.constant 0 : index
    %c0_22 = arith.constant 0 : index
    %27 = vector.load %arg8[%c0_21, %c0_22] : memref<1x17xf32, #tpu.memory_space<vmem>>, vector<1x17xf32>
    %28 = vector.broadcast %27 : vector<1x17xf32> to vector<4x17xf32>
    %29 = arith.addf %26, %28 : vector<4x17xf32>
    %30 = vector.extract_strided_slice %29 {offsets = [0, 0], sizes = [4, 16], strides = [1, 1]} : vector<4x17xf32> to vector<4x16xf32>
    %31 = arith.mulf %30, %30 : vector<4x16xf32>
    %cst_23 = arith.constant dense<0.000000e+00> : vector<4xf32>
    %32 = vector.multi_reduction <add>, %31, %cst_23 [1] : vector<4x16xf32> to vector<4xf32>
    %33 = vector.shape_cast %32 : vector<4xf32> to vector<4x1xf32>
    %34 = math.sqrt %33 : vector<4x1xf32>
    %35 = vector.broadcast %34 : vector<4x1xf32> to vector<4x16xf32>
    %36 = arith.divf %30, %35 : vector<4x16xf32>
    %37 = vector.extract_strided_slice %29 {offsets = [0, 16], sizes = [4, 1], strides = [1, 1]} : vector<4x17xf32> to vector<4x1xf32>
    %38 = math.exp %37 : vector<4x1xf32>
    %cst_24 = arith.constant 1.000000e+00 : f32
    %39 = vector.broadcast %cst_24 : f32 to vector<4x1xf32>
    %40 = arith.addf %39, %38 : vector<4x1xf32>
    %41 = math.log %40 : vector<4x1xf32>
    %cst_25 = arith.constant 1.000000e+00 : f32
    %42 = vector.broadcast %cst_25 : f32 to vector<4x1xf32>
    %43 = arith.addf %41, %42 : vector<4x1xf32>
    %c0_26 = arith.constant 0 : index
    %c0_27 = arith.constant 0 : index
    %44 = vector.load %arg9[%c0_26, %c0_27] : memref<32x64xf32, #tpu.memory_space<vmem>>, vector<32x64xf32>
    %cst_28 = arith.constant dense<0.000000e+00> : vector<4x64xf32>
    %45 = tpu.matmul %17, %44, %cst_28 {dimension_numbers = #tpu.dot_dimension_numbers<[1], [0], [0], [1], [0, 0, 1, 1], [], []>} : vector<4x32xf32>, vector<32x64xf32>, vector<4x64xf32> -> vector<4x64xf32>
    %c0_29 = arith.constant 0 : index
    %c0_30 = arith.constant 0 : index
    %46 = vector.load %arg10[%c0_29, %c0_30] : memref<1x64xf32, #tpu.memory_space<vmem>>, vector<1x64xf32>
    %47 = vector.broadcast %46 : vector<1x64xf32> to vector<4x64xf32>
    %48 = arith.addf %45, %47 : vector<4x64xf32>
    %cst_31 = arith.constant 0.000000e+00 : f32
    %49 = vector.broadcast %cst_31 : f32 to vector<4x64xf32>
    %50 = arith.maximumf %48, %49 : vector<4x64xf32>
    %c0_32 = arith.constant 0 : index
    %c0_33 = arith.constant 0 : index
    %51 = vector.load %arg11[%c0_32, %c0_33] : memref<64x32xf32, #tpu.memory_space<vmem>>, vector<64x32xf32>
    %cst_34 = arith.constant dense<0.000000e+00> : vector<4x32xf32>
    %52 = tpu.matmul %50, %51, %cst_34 {dimension_numbers = #tpu.dot_dimension_numbers<[1], [0], [0], [1], [0, 0, 1, 1], [], []>} : vector<4x64xf32>, vector<64x32xf32>, vector<4x32xf32> -> vector<4x32xf32>
    %c0_35 = arith.constant 0 : index
    %c0_36 = arith.constant 0 : index
    %53 = vector.load %arg12[%c0_35, %c0_36] : memref<1x32xf32, #tpu.memory_space<vmem>>, vector<1x32xf32>
    %54 = vector.broadcast %53 : vector<1x32xf32> to vector<4x32xf32>
    %55 = arith.addf %52, %54 : vector<4x32xf32>
    %56 = vector.extract_strided_slice %55 {offsets = [0, 0], sizes = [4, 16], strides = [1, 1]} : vector<4x32xf32> to vector<4x16xf32>
    %57 = vector.extract_strided_slice %55 {offsets = [0, 16], sizes = [4, 16], strides = [1, 1]} : vector<4x32xf32> to vector<4x16xf32>
    %cst_37 = arith.constant 5.000000e-01 : f32
    %58 = vector.broadcast %cst_37 : f32 to vector<4x16xf32>
    %59 = arith.mulf %58, %57 : vector<4x16xf32>
    %60 = math.exp %59 : vector<4x16xf32>
    %c0_38 = arith.constant 0 : index
    %c0_39 = arith.constant 0 : index
    %61 = vector.load %arg13[%c0_38, %c0_39] : memref<4x16xf32, #tpu.memory_space<vmem>>, vector<4x16xf32>
    %62 = arith.mulf %60, %61 : vector<4x16xf32>
    %63 = arith.addf %56, %62 : vector<4x16xf32>
    %c0_40 = arith.constant 0 : index
    %c0_41 = arith.constant 0 : index
    %64 = vector.load %arg16[%c0_40, %c0_41] : memref<4x16xf32, #tpu.memory_space<vmem>>, vector<4x16xf32>
    tpu.vector_store %arg16[%c0_40, %c0_41], %63 {strides = array<i32>} : memref<4x16xf32, #tpu.memory_space<vmem>>, vector<4x16xf32>,
    %c0_42 = arith.constant 0 : index
    %c0_43 = arith.constant 0 : index
    %65 = vector.load %arg14[%c0_42, %c0_43] : memref<4x16xf32, #tpu.memory_space<vmem>>, vector<4x16xf32>
    %66 = math.sqrt %43 : vector<4x1xf32>
    %67 = vector.broadcast %66 : vector<4x1xf32> to vector<4x16xf32>
    %68 = arith.divf %65, %67 : vector<4x16xf32>
    %69 = arith.addf %36, %68 : vector<4x16xf32>
    %70 = arith.mulf %69, %69 : vector<4x16xf32>
    %cst_44 = arith.constant dense<0.000000e+00> : vector<4xf32>
    %71 = vector.multi_reduction <add>, %70, %cst_44 [1] : vector<4x16xf32> to vector<4xf32>
    %72 = vector.shape_cast %71 : vector<4xf32> to vector<4x1xf32>
    %73 = math.sqrt %72 : vector<4x1xf32>
    %74 = vector.broadcast %73 : vector<4x1xf32> to vector<4x16xf32>
    %75 = arith.divf %69, %74 : vector<4x16xf32>
    %c0_45 = arith.constant 0 : index
    %c0_46 = arith.constant 0 : index
    %76 = vector.load %arg15[%c0_45, %c0_46] : memref<4x16xf32, #tpu.memory_space<vmem>>, vector<4x16xf32>
    tpu.vector_store %arg15[%c0_45, %c0_46], %75 {strides = array<i32>} : memref<4x16xf32, #tpu.memory_space<vmem>>, vector<4x16xf32>,
    %cst_47 = arith.constant 1.000000e+00 : f32
    %77 = vector.broadcast %cst_47 : f32 to vector<4x16xf32>
    %78 = arith.addf %77, %57 : vector<4x16xf32>
    %79 = arith.mulf %56, %56 : vector<4x16xf32>
    %80 = arith.subf %78, %79 : vector<4x16xf32>
    %81 = math.exp %57 : vector<4x16xf32>
    %82 = arith.subf %80, %81 : vector<4x16xf32>
    %cst_48 = arith.constant -5.000000e-01 : f32
    %83 = vector.broadcast %cst_48 : f32 to vector<4x16xf32>
    %84 = arith.mulf %83, %82 : vector<4x16xf32>
    %85 = vector.shape_cast %84 : vector<4x16xf32> to vector<1x4x16xf32>
    %cst_49 = arith.constant dense<0.000000e+00> : vector<1xf32>
    %86 = vector.multi_reduction <add>, %85, %cst_49 [1, 2] : vector<1x4x16xf32> to vector<1xf32>
    %87 = vector.shape_cast %86 : vector<1xf32> to vector<1x1x1xf32>
    %88 = vector.extract %87[0, 0, 0] : f32 from vector<1x1x1xf32>
    %cst_50 = arith.constant 2.000000e+00 : f32
    %89 = arith.divf %88, %cst_50 : f32
    %cst_51 = arith.constant 1.000000e+00 : f32
    %90 = vector.broadcast %cst_51 : f32 to vector<4x1xf32>
    %91 = arith.subf %43, %90 : vector<4x1xf32>
    %92 = vector.shape_cast %91 : vector<4x1xf32> to vector<1x4x1xf32>
    %cst_52 = arith.constant dense<0.000000e+00> : vector<1xf32>
    %93 = vector.multi_reduction <add>, %92, %cst_52 [1, 2] : vector<1x4x1xf32> to vector<1xf32>
    %94 = vector.shape_cast %93 : vector<1xf32> to vector<1x1x1xf32>
    %95 = vector.extract %94[0, 0, 0] : f32 from vector<1x1x1xf32>
    %cst_53 = arith.constant 2.000000e+00 : f32
    %96 = arith.divf %95, %cst_53 : f32
    %97 = tpu.iota {dimensions = array<i32: 1>} : vector<1x128xi32>
    %c0_i32 = arith.constant 0 : i32
    %98 = vector.broadcast %c0_i32 : i32 to vector<1x128xi32>
    %99 = arith.cmpi eq, %97, %98 : vector<1x128xi32>
    %cst_54 = arith.constant 0.000000e+00 : f32
    %100 = vector.broadcast %96 : f32 to vector<1x128xf32>
    %101 = vector.broadcast %cst_54 : f32 to vector<1x128xf32>
    %102 = arith.select %99, %100, %101 : vector<1x128xi1>, vector<1x128xf32>
    %c1_i32 = arith.constant 1 : i32
    %103 = vector.broadcast %c1_i32 : i32 to vector<1x128xi32>
    %104 = arith.cmpi eq, %97, %103 : vector<1x128xi32>
    %cst_55 = arith.constant 0.000000e+00 : f32
    %105 = vector.broadcast %89 : f32 to vector<1x128xf32>
    %106 = vector.broadcast %cst_55 : f32 to vector<1x128xf32>
    %107 = arith.select %104, %105, %106 : vector<1x128xi1>, vector<1x128xf32>
    %108 = arith.addf %102, %107 : vector<1x128xf32>
    %c0_56 = arith.constant 0 : index
    %c0_57 = arith.constant 0 : index
    %109 = vector.load %arg17[%c0_56, %c0_57] : memref<1x128xf32, #tpu.memory_space<vmem>>, vector<1x128xf32>
    tpu.vector_store %arg17[%c0_56, %c0_57], %108 {strides = array<i32>} : memref<1x128xf32, #tpu.memory_space<vmem>>, vector<1x128xf32>,
    return
  }
}

module attributes {stable_mosaic.version = 11 : i64} {
  func.func @_pos_loss_kernel(%arg0: i32, %arg1: memref<1x32x1xi32, #tpu.memory_space<vmem>>, %arg2: memref<1x32x1xf32, #tpu.memory_space<vmem>>, %arg3: memref<1x4x32xf32, #tpu.memory_space<vmem>>, %arg4: memref<1x4x16xf32, #tpu.memory_space<vmem>>, %arg5: memref<1x64x32xf32, #tpu.memory_space<vmem>>, %arg6: memref<1x32x32xf32, #tpu.memory_space<vmem>>, %arg7: memref<1x16x32xf32, #tpu.memory_space<vmem>>, %arg8: memref<1x1x32xf32, #tpu.memory_space<vmem>>, %arg9: memref<1x32x32xf32, #tpu.memory_space<vmem>>, %arg10: memref<1x1x32xf32, #tpu.memory_space<vmem>>, %arg11: memref<32x4xf32, #tpu.memory_space<vmem>>, %arg12: memref<32x32xf32, #tpu.memory_space<vmem>>, %arg13: memref<1x1x128xf32, #tpu.memory_space<vmem>>) attributes {dimension_semantics = [#tpu.dimension_semantics<parallel>], iteration_bounds = array<i64: 2>, scalar_prefetch = 0 : i64, scratch_operands = 0 : i64, tpu.core_type = #tpu.core_type<tc>, window_params = [{transform_indices = @transform_0, window_bounds = array<i64: 1, 32, 1>}, {transform_indices = @transform_1, window_bounds = array<i64: 1, 32, 1>}, {transform_indices = @transform_2, window_bounds = array<i64: 1, 4, 32>}, {transform_indices = @transform_3, window_bounds = array<i64: 1, 4, 16>}, {transform_indices = @transform_4, window_bounds = array<i64: 1, 64, 32>}, {transform_indices = @transform_5, window_bounds = array<i64: 1, 32, 32>}, {transform_indices = @transform_6, window_bounds = array<i64: 1, 16, 32>}, {transform_indices = @transform_7, window_bounds = array<i64: 1, 1, 32>}, {transform_indices = @transform_8, window_bounds = array<i64: 1, 32, 32>}, {transform_indices = @transform_9, window_bounds = array<i64: 1, 1, 32>}, {pipeline_mode = #tpu.pipeline_mode<synchronous>, transform_indices = @transform_10, window_bounds = array<i64: 32, 4>}, {pipeline_mode = #tpu.pipeline_mode<synchronous>, transform_indices = @transform_11, window_bounds = array<i64: 32, 32>}, {transform_indices = @transform_12, window_bounds = array<i64: 1, 1, 128>}]} {
    %0 = tpu.iota {dimensions = array<i32: 1>} : vector<32x64xi32>
    %c0 = arith.constant 0 : index
    %c0_0 = arith.constant 0 : index
    %c0_1 = arith.constant 0 : index
    %1 = vector.load %arg1[%c0, %c0_0, %c0_1] : memref<1x32x1xi32, #tpu.memory_space<vmem>>, vector<1x32x1xi32>
    %2 = vector.shape_cast %1 : vector<1x32x1xi32> to vector<32x1xi32>
    %3 = vector.broadcast %2 : vector<32x1xi32> to vector<32x64xi32>
    %4 = arith.cmpi eq, %3, %0 : vector<32x64xi32>
    %5 = arith.extui %4 : vector<32x64xi1> to vector<32x64xi32>
    %6 = arith.sitofp %5 : vector<32x64xi32> to vector<32x64xf32>
    %c0_2 = arith.constant 0 : index
    %c0_3 = arith.constant 0 : index
    %c0_4 = arith.constant 0 : index
    %7 = vector.load %arg5[%c0_2, %c0_3, %c0_4] : memref<1x64x32xf32, #tpu.memory_space<vmem>>, vector<1x64x32xf32>
    %8 = vector.shape_cast %7 : vector<1x64x32xf32> to vector<64x32xf32>
    %cst = arith.constant dense<0.000000e+00> : vector<32x32xf32>
    %9 = tpu.matmul %6, %8, %cst {dimension_numbers = #tpu.dot_dimension_numbers<[1], [0], [0], [1], [0, 0, 1, 1], [], []>} : vector<32x64xf32>, vector<64x32xf32>, vector<32x32xf32> -> vector<32x32xf32>
    %c0_5 = arith.constant 0 : index
    %c0_6 = arith.constant 0 : index
    %c0_7 = arith.constant 0 : index
    %10 = vector.load %arg4[%c0_5, %c0_6, %c0_7] : memref<1x4x16xf32, #tpu.memory_space<vmem>>, vector<1x4x16xf32>
    %11 = vector.shape_cast %10 : vector<1x4x16xf32> to vector<4x16xf32>
    %c0_8 = arith.constant 0 : index
    %c0_9 = arith.constant 0 : index
    %c0_10 = arith.constant 0 : index
    %12 = vector.load %arg7[%c0_8, %c0_9, %c0_10] : memref<1x16x32xf32, #tpu.memory_space<vmem>>, vector<1x16x32xf32>
    %13 = vector.shape_cast %12 : vector<1x16x32xf32> to vector<16x32xf32>
    %cst_11 = arith.constant dense<0.000000e+00> : vector<4x32xf32>
    %14 = tpu.matmul %11, %13, %cst_11 {dimension_numbers = #tpu.dot_dimension_numbers<[1], [0], [0], [1], [0, 0, 1, 1], [], []>} : vector<4x16xf32>, vector<16x32xf32>, vector<4x32xf32> -> vector<4x32xf32>
    %c0_12 = arith.constant 0 : index
    %c0_13 = arith.constant 0 : index
    %c0_14 = arith.constant 0 : index
    %15 = vector.load %arg8[%c0_12, %c0_13, %c0_14] : memref<1x1x32xf32, #tpu.memory_space<vmem>>, vector<1x1x32xf32>
    %16 = vector.shape_cast %15 : vector<1x1x32xf32> to vector<1x32xf32>
    %17 = vector.broadcast %16 : vector<1x32xf32> to vector<4x32xf32>
    %18 = arith.addf %14, %17 : vector<4x32xf32>
    %c0_15 = arith.constant 0 : index
    %c0_16 = arith.constant 0 : index
    %19 = vector.load %arg11[%c0_15, %c0_16] : memref<32x4xf32, #tpu.memory_space<vmem>>, vector<32x4xf32>
    %cst_17 = arith.constant dense<0.000000e+00> : vector<32x32xf32>
    %20 = tpu.matmul %19, %18, %cst_17 {dimension_numbers = #tpu.dot_dimension_numbers<[1], [0], [0], [1], [0, 0, 1, 1], [], []>} : vector<32x4xf32>, vector<4x32xf32>, vector<32x32xf32> -> vector<32x32xf32>
    %c0_18 = arith.constant 0 : index
    %c0_19 = arith.constant 0 : index
    %c0_20 = arith.constant 0 : index
    %21 = vector.load %arg6[%c0_18, %c0_19, %c0_20] : memref<1x32x32xf32, #tpu.memory_space<vmem>>, vector<1x32x32xf32>
    %22 = vector.shape_cast %21 : vector<1x32x32xf32> to vector<32x32xf32>
    %cst_21 = arith.constant dense<0.000000e+00> : vector<32x32xf32>
    %23 = tpu.matmul %9, %22, %cst_21 {dimension_numbers = #tpu.dot_dimension_numbers<[1], [0], [0], [1], [0, 0, 1, 1], [], []>} : vector<32x32xf32>, vector<32x32xf32>, vector<32x32xf32> -> vector<32x32xf32>
    %24 = arith.addf %23, %20 : vector<32x32xf32>
    %cst_22 = arith.constant 0.000000e+00 : f32
    %25 = vector.broadcast %cst_22 : f32 to vector<32x32xf32>
    %26 = arith.maximumf %24, %25 : vector<32x32xf32>
    %c0_23 = arith.constant 0 : index
    %c0_24 = arith.constant 0 : index
    %c0_25 = arith.constant 0 : index
    %27 = vector.load %arg9[%c0_23, %c0_24, %c0_25] : memref<1x32x32xf32, #tpu.memory_space<vmem>>, vector<1x32x32xf32>
    %28 = vector.shape_cast %27 : vector<1x32x32xf32> to vector<32x32xf32>
    %cst_26 = arith.constant dense<0.000000e+00> : vector<32x32xf32>
    %29 = tpu.matmul %26, %28, %cst_26 {dimension_numbers = #tpu.dot_dimension_numbers<[1], [0], [0], [1], [0, 0, 1, 1], [], []>} : vector<32x32xf32>, vector<32x32xf32>, vector<32x32xf32> -> vector<32x32xf32>
    %c0_27 = arith.constant 0 : index
    %c0_28 = arith.constant 0 : index
    %c0_29 = arith.constant 0 : index
    %30 = vector.load %arg10[%c0_27, %c0_28, %c0_29] : memref<1x1x32xf32, #tpu.memory_space<vmem>>, vector<1x1x32xf32>
    %31 = vector.shape_cast %30 : vector<1x1x32xf32> to vector<1x32xf32>
    %32 = vector.broadcast %31 : vector<1x32xf32> to vector<32x32xf32>
    %33 = arith.addf %29, %32 : vector<32x32xf32>
    %c0_30 = arith.constant 0 : index
    %c0_31 = arith.constant 0 : index
    %34 = vector.load %arg11[%c0_30, %c0_31] : memref<32x4xf32, #tpu.memory_space<vmem>>, vector<32x4xf32>
    %c0_32 = arith.constant 0 : index
    %c0_33 = arith.constant 0 : index
    %c0_34 = arith.constant 0 : index
    %35 = vector.load %arg3[%c0_32, %c0_33, %c0_34] : memref<1x4x32xf32, #tpu.memory_space<vmem>>, vector<1x4x32xf32>
    %36 = vector.shape_cast %35 : vector<1x4x32xf32> to vector<4x32xf32>
    %cst_35 = arith.constant dense<0.000000e+00> : vector<32x32xf32>
    %37 = tpu.matmul %34, %36, %cst_35 {dimension_numbers = #tpu.dot_dimension_numbers<[1], [0], [0], [1], [0, 0, 1, 1], [], []>} : vector<32x4xf32>, vector<4x32xf32>, vector<32x32xf32> -> vector<32x32xf32>
    %cst_36 = arith.constant 5.000000e-01 : f32
    %38 = vector.broadcast %cst_36 : f32 to vector<32x32xf32>
    %39 = arith.cmpf ogt, %37, %38 : vector<32x32xf32>
    %cst_37 = arith.constant -1.000000e+30 : f32
    %40 = vector.broadcast %cst_37 : f32 to vector<32x32xf32>
    %41 = arith.select %39, %33, %40 : vector<32x32xi1>, vector<32x32xf32>
    %cst_38 = arith.constant dense<0xFF800000> : vector<32xf32>
    %42 = vector.multi_reduction <maximumf>, %41, %cst_38 [1] : vector<32x32xf32> to vector<32xf32>
    %43 = vector.shape_cast %42 : vector<32xf32> to vector<32x1xf32>
    %44 = vector.broadcast %43 : vector<32x1xf32> to vector<32x32xf32>
    %45 = arith.subf %41, %44 : vector<32x32xf32>
    %46 = math.exp %45 : vector<32x32xf32>
    %cst_39 = arith.constant dense<0.000000e+00> : vector<32xf32>
    %47 = vector.multi_reduction <add>, %46, %cst_39 [1] : vector<32x32xf32> to vector<32xf32>
    %48 = vector.shape_cast %47 : vector<32xf32> to vector<32x1xf32>
    %49 = math.log %48 : vector<32x1xf32>
    %50 = arith.addf %49, %43 : vector<32x1xf32>
    %c0_40 = arith.constant 0 : index
    %c0_41 = arith.constant 0 : index
    %51 = vector.load %arg12[%c0_40, %c0_41] : memref<32x32xf32, #tpu.memory_space<vmem>>, vector<32x32xf32>
    %cst_42 = arith.constant 5.000000e-01 : f32
    %52 = vector.broadcast %cst_42 : f32 to vector<32x32xf32>
    %53 = arith.cmpf ogt, %51, %52 : vector<32x32xf32>
    %cst_43 = arith.constant 0.000000e+00 : f32
    %54 = vector.broadcast %cst_43 : f32 to vector<32x32xf32>
    %55 = arith.select %53, %41, %54 : vector<32x32xi1>, vector<32x32xf32>
    %cst_44 = arith.constant dense<0.000000e+00> : vector<32xf32>
    %56 = vector.multi_reduction <add>, %55, %cst_44 [1] : vector<32x32xf32> to vector<32xf32>
    %57 = vector.shape_cast %56 : vector<32xf32> to vector<32x1xf32>
    %58 = arith.subf %57, %50 : vector<32x1xf32>
    %59 = math.exp %58 : vector<32x1xf32>
    %cst_45 = arith.constant 9.99999993E-9 : f32
    %60 = vector.broadcast %cst_45 : f32 to vector<32x1xf32>
    %61 = arith.addf %59, %60 : vector<32x1xf32>
    %62 = math.log %61 : vector<32x1xf32>
    %cst_46 = arith.constant 0.000000e+00 : f32
    %63 = vector.broadcast %cst_46 : f32 to vector<32x1xf32>
    %64 = arith.subf %63, %62 : vector<32x1xf32>
    %c0_47 = arith.constant 0 : index
    %c0_48 = arith.constant 0 : index
    %c0_49 = arith.constant 0 : index
    %65 = vector.load %arg2[%c0_47, %c0_48, %c0_49] : memref<1x32x1xf32, #tpu.memory_space<vmem>>, vector<1x32x1xf32>
    %66 = vector.shape_cast %65 : vector<1x32x1xf32> to vector<32x1xf32>
    %67 = arith.mulf %64, %66 : vector<32x1xf32>
    %68 = vector.shape_cast %67 : vector<32x1xf32> to vector<1x32x1xf32>
    %cst_50 = arith.constant dense<0.000000e+00> : vector<1xf32>
    %69 = vector.multi_reduction <add>, %68, %cst_50 [1, 2] : vector<1x32x1xf32> to vector<1xf32>
    %70 = vector.shape_cast %69 : vector<1xf32> to vector<1x1x1xf32>
    %71 = vector.extract %70[0, 0, 0] : f32 from vector<1x1x1xf32>
    %cst_51 = arith.constant 2.000000e+00 : f32
    %72 = arith.divf %71, %cst_51 : f32
    %73 = tpu.iota {dimensions = array<i32: 1>} : vector<1x128xi32>
    %c0_i32 = arith.constant 0 : i32
    %74 = vector.broadcast %c0_i32 : i32 to vector<1x128xi32>
    %75 = arith.cmpi eq, %73, %74 : vector<1x128xi32>
    %cst_52 = arith.constant 0.000000e+00 : f32
    %76 = vector.broadcast %72 : f32 to vector<1x128xf32>
    %77 = vector.broadcast %cst_52 : f32 to vector<1x128xf32>
    %78 = arith.select %75, %76, %77 : vector<1x128xi1>, vector<1x128xf32>
    %c0_53 = arith.constant 0 : index
    %c0_54 = arith.constant 0 : index
    %c0_55 = arith.constant 0 : index
    %79 = vector.load %arg13[%c0_53, %c0_54, %c0_55] : memref<1x1x128xf32, #tpu.memory_space<vmem>>, vector<1x1x128xf32>
    %80 = vector.shape_cast %79 : vector<1x1x128xf32> to vector<1x128xf32>
    %81 = vector.shape_cast %78 : vector<1x128xf32> to vector<1x1x128xf32>
    tpu.vector_store %arg13[%c0_53, %c0_54, %c0_55], %81 {strides = array<i32>} : memref<1x1x128xf32, #tpu.memory_space<vmem>>, vector<1x1x128xf32>,
    return
  }
  func.func @transform_0(%arg0: i32) -> (i32, i32, i32) {
    %c0_i32 = arith.constant 0 : i32
    %c0_i32_0 = arith.constant 0 : i32
    %c0_i32_1 = arith.constant 0 : i32
    return %arg0, %c0_i32, %c0_i32_0 : i32, i32, i32
  }
  func.func @transform_1(%arg0: i32) -> (i32, i32, i32) {
    %c0_i32 = arith.constant 0 : i32
    %c0_i32_0 = arith.constant 0 : i32
    %c0_i32_1 = arith.constant 0 : i32
    return %arg0, %c0_i32, %c0_i32_0 : i32, i32, i32
  }
  func.func @transform_2(%arg0: i32) -> (i32, i32, i32) {
    %c0_i32 = arith.constant 0 : i32
    %c0_i32_0 = arith.constant 0 : i32
    %c0_i32_1 = arith.constant 0 : i32
    return %arg0, %c0_i32, %c0_i32_0 : i32, i32, i32
  }
  func.func @transform_3(%arg0: i32) -> (i32, i32, i32) {
    %c0_i32 = arith.constant 0 : i32
    %c0_i32_0 = arith.constant 0 : i32
    %c0_i32_1 = arith.constant 0 : i32
    return %arg0, %c0_i32, %c0_i32_0 : i32, i32, i32
  }
  func.func @transform_4(%arg0: i32) -> (i32, i32, i32) {
    %c0_i32 = arith.constant 0 : i32
    %c0_i32_0 = arith.constant 0 : i32
    %c0_i32_1 = arith.constant 0 : i32
    return %arg0, %c0_i32, %c0_i32_0 : i32, i32, i32
  }
  func.func @transform_5(%arg0: i32) -> (i32, i32, i32) {
    %c0_i32 = arith.constant 0 : i32
    %c0_i32_0 = arith.constant 0 : i32
    %c0_i32_1 = arith.constant 0 : i32
    return %arg0, %c0_i32, %c0_i32_0 : i32, i32, i32
  }
  func.func @transform_6(%arg0: i32) -> (i32, i32, i32) {
    %c0_i32 = arith.constant 0 : i32
    %c0_i32_0 = arith.constant 0 : i32
    %c0_i32_1 = arith.constant 0 : i32
    return %arg0, %c0_i32, %c0_i32_0 : i32, i32, i32
  }
  func.func @transform_7(%arg0: i32) -> (i32, i32, i32) {
    %c0_i32 = arith.constant 0 : i32
    %c0_i32_0 = arith.constant 0 : i32
    %c0_i32_1 = arith.constant 0 : i32
    return %arg0, %c0_i32, %c0_i32_0 : i32, i32, i32
  }
  func.func @transform_8(%arg0: i32) -> (i32, i32, i32) {
    %c0_i32 = arith.constant 0 : i32
    %c0_i32_0 = arith.constant 0 : i32
    %c0_i32_1 = arith.constant 0 : i32
    return %arg0, %c0_i32, %c0_i32_0 : i32, i32, i32
  }
  func.func @transform_9(%arg0: i32) -> (i32, i32, i32) {
    %c0_i32 = arith.constant 0 : i32
    %c0_i32_0 = arith.constant 0 : i32
    %c0_i32_1 = arith.constant 0 : i32
    return %arg0, %c0_i32, %c0_i32_0 : i32, i32, i32
  }
  func.func @transform_10(%arg0: i32) -> (i32, i32) {
    %c0_i32 = arith.constant 0 : i32
    %c0_i32_0 = arith.constant 0 : i32
    %c0_i32_1 = arith.constant 0 : i32
    return %c0_i32, %c0_i32_0 : i32, i32
  }
  func.func @transform_11(%arg0: i32) -> (i32, i32) {
    %c0_i32 = arith.constant 0 : i32
    %c0_i32_0 = arith.constant 0 : i32
    %c0_i32_1 = arith.constant 0 : i32
    return %c0_i32, %c0_i32_0 : i32, i32
  }
  func.func @transform_12(%arg0: i32) -> (i32, i32, i32) {
    %c0_i32 = arith.constant 0 : i32
    %c0_i32_0 = arith.constant 0 : i32
    %c0_i32_1 = arith.constant 0 : i32
    return %arg0, %c0_i32, %c0_i32_0 : i32, i32, i32
  }
}

module attributes {stable_mosaic.version = 11 : i64} {
  func.func @_decode_kernel(%arg0: i32, %arg1: memref<1x32x1xi32, #tpu.memory_space<vmem>>, %arg2: memref<1x32x1xf32, #tpu.memory_space<vmem>>, %arg3: memref<32x1xi32, #tpu.memory_space<vmem>>, %arg4: memref<32x4xf32, #tpu.memory_space<vmem>>, %arg5: memref<1x4x16xf32, #tpu.memory_space<vmem>>, %arg6: memref<1x4x16xf32, #tpu.memory_space<vmem>>, %arg7: memref<64x32xf32, #tpu.memory_space<vmem>>, %arg8: memref<32x32xf32, #tpu.memory_space<vmem>>, %arg9: memref<16x32xf32, #tpu.memory_space<vmem>>, %arg10: memref<16x32xf32, #tpu.memory_space<vmem>>, %arg11: memref<1x32xf32, #tpu.memory_space<vmem>>, %arg12: memref<32x32xf32, #tpu.memory_space<vmem>>, %arg13: memref<1x32xf32, #tpu.memory_space<vmem>>, %arg14: memref<32x64xf32, #tpu.memory_space<vmem>>, %arg15: memref<1x64xf32, #tpu.memory_space<vmem>>, %arg16: memref<1x1x128xf32, #tpu.memory_space<vmem>>) attributes {dimension_semantics = [#tpu.dimension_semantics<parallel>], iteration_bounds = array<i64: 2>, scalar_prefetch = 0 : i64, scratch_operands = 0 : i64, tpu.core_type = #tpu.core_type<tc>, window_params = [{transform_indices = @transform_0, window_bounds = array<i64: 1, 32, 1>}, {transform_indices = @transform_1, window_bounds = array<i64: 1, 32, 1>}, {pipeline_mode = #tpu.pipeline_mode<synchronous>, transform_indices = @transform_2, window_bounds = array<i64: 32, 1>}, {pipeline_mode = #tpu.pipeline_mode<synchronous>, transform_indices = @transform_3, window_bounds = array<i64: 32, 4>}, {transform_indices = @transform_4, window_bounds = array<i64: 1, 4, 16>}, {transform_indices = @transform_5, window_bounds = array<i64: 1, 4, 16>}, {pipeline_mode = #tpu.pipeline_mode<synchronous>, transform_indices = @transform_6, window_bounds = array<i64: 64, 32>}, {pipeline_mode = #tpu.pipeline_mode<synchronous>, transform_indices = @transform_7, window_bounds = array<i64: 32, 32>}, {pipeline_mode = #tpu.pipeline_mode<synchronous>, transform_indices = @transform_8, window_bounds = array<i64: 16, 32>}, {pipeline_mode = #tpu.pipeline_mode<synchronous>, transform_indices = @transform_9, window_bounds = array<i64: 16, 32>}, {pipeline_mode = #tpu.pipeline_mode<synchronous>, transform_indices = @transform_10, window_bounds = array<i64: 1, 32>}, {pipeline_mode = #tpu.pipeline_mode<synchronous>, transform_indices = @transform_11, window_bounds = array<i64: 32, 32>}, {pipeline_mode = #tpu.pipeline_mode<synchronous>, transform_indices = @transform_12, window_bounds = array<i64: 1, 32>}, {pipeline_mode = #tpu.pipeline_mode<synchronous>, transform_indices = @transform_13, window_bounds = array<i64: 32, 64>}, {pipeline_mode = #tpu.pipeline_mode<synchronous>, transform_indices = @transform_14, window_bounds = array<i64: 1, 64>}, {transform_indices = @transform_15, window_bounds = array<i64: 1, 1, 128>}]} {
    %0 = tpu.iota {dimensions = array<i32: 1>} : vector<32x64xi32>
    %c0 = arith.constant 0 : index
    %c0_0 = arith.constant 0 : index
    %c0_1 = arith.constant 0 : index
    %1 = vector.load %arg1[%c0, %c0_0, %c0_1] : memref<1x32x1xi32, #tpu.memory_space<vmem>>, vector<1x32x1xi32>
    %2 = vector.shape_cast %1 : vector<1x32x1xi32> to vector<32x1xi32>
    %3 = vector.broadcast %2 : vector<32x1xi32> to vector<32x64xi32>
    %4 = arith.cmpi eq, %3, %0 : vector<32x64xi32>
    %5 = arith.extui %4 : vector<32x64xi1> to vector<32x64xi32>
    %6 = arith.sitofp %5 : vector<32x64xi32> to vector<32x64xf32>
    %c0_2 = arith.constant 0 : index
    %c0_3 = arith.constant 0 : index
    %7 = vector.load %arg7[%c0_2, %c0_3] : memref<64x32xf32, #tpu.memory_space<vmem>>, vector<64x32xf32>
    %cst = arith.constant dense<0.000000e+00> : vector<32x32xf32>
    %8 = tpu.matmul %6, %7, %cst {dimension_numbers = #tpu.dot_dimension_numbers<[1], [0], [0], [1], [0, 0, 1, 1], [], []>} : vector<32x64xf32>, vector<64x32xf32>, vector<32x32xf32> -> vector<32x32xf32>
    %c0_4 = arith.constant 0 : index
    %c0_5 = arith.constant 0 : index
    %c0_6 = arith.constant 0 : index
    %9 = vector.load %arg5[%c0_4, %c0_5, %c0_6] : memref<1x4x16xf32, #tpu.memory_space<vmem>>, vector<1x4x16xf32>
    %10 = vector.shape_cast %9 : vector<1x4x16xf32> to vector<4x16xf32>
    %c0_7 = arith.constant 0 : index
    %c0_8 = arith.constant 0 : index
    %11 = vector.load %arg9[%c0_7, %c0_8] : memref<16x32xf32, #tpu.memory_space<vmem>>, vector<16x32xf32>
    %cst_9 = arith.constant dense<0.000000e+00> : vector<4x32xf32>
    %12 = tpu.matmul %10, %11, %cst_9 {dimension_numbers = #tpu.dot_dimension_numbers<[1], [0], [0], [1], [0, 0, 1, 1], [], []>} : vector<4x16xf32>, vector<16x32xf32>, vector<4x32xf32> -> vector<4x32xf32>
    %c0_10 = arith.constant 0 : index
    %c0_11 = arith.constant 0 : index
    %c0_12 = arith.constant 0 : index
    %13 = vector.load %arg6[%c0_10, %c0_11, %c0_12] : memref<1x4x16xf32, #tpu.memory_space<vmem>>, vector<1x4x16xf32>
    %14 = vector.shape_cast %13 : vector<1x4x16xf32> to vector<4x16xf32>
    %c0_13 = arith.constant 0 : index
    %c0_14 = arith.constant 0 : index
    %15 = vector.load %arg10[%c0_13, %c0_14] : memref<16x32xf32, #tpu.memory_space<vmem>>, vector<16x32xf32>
    %cst_15 = arith.constant dense<0.000000e+00> : vector<4x32xf32>
    %16 = tpu.matmul %14, %15, %cst_15 {dimension_numbers = #tpu.dot_dimension_numbers<[1], [0], [0], [1], [0, 0, 1, 1], [], []>} : vector<4x16xf32>, vector<16x32xf32>, vector<4x32xf32> -> vector<4x32xf32>
    %17 = arith.addf %12, %16 : vector<4x32xf32>
    %c0_16 = arith.constant 0 : index
    %c0_17 = arith.constant 0 : index
    %18 = vector.load %arg11[%c0_16, %c0_17] : memref<1x32xf32, #tpu.memory_space<vmem>>, vector<1x32xf32>
    %19 = vector.broadcast %18 : vector<1x32xf32> to vector<4x32xf32>
    %20 = arith.addf %17, %19 : vector<4x32xf32>
    %c0_18 = arith.constant 0 : index
    %c0_19 = arith.constant 0 : index
    %21 = vector.load %arg4[%c0_18, %c0_19] : memref<32x4xf32, #tpu.memory_space<vmem>>, vector<32x4xf32>
    %cst_20 = arith.constant dense<0.000000e+00> : vector<32x32xf32>
    %22 = tpu.matmul %21, %20, %cst_20 {dimension_numbers = #tpu.dot_dimension_numbers<[1], [0], [0], [1], [0, 0, 1, 1], [], []>} : vector<32x4xf32>, vector<4x32xf32>, vector<32x32xf32> -> vector<32x32xf32>
    %c0_21 = arith.constant 0 : index
    %c0_22 = arith.constant 0 : index
    %23 = vector.load %arg8[%c0_21, %c0_22] : memref<32x32xf32, #tpu.memory_space<vmem>>, vector<32x32xf32>
    %cst_23 = arith.constant dense<0.000000e+00> : vector<32x32xf32>
    %24 = tpu.matmul %8, %23, %cst_23 {dimension_numbers = #tpu.dot_dimension_numbers<[1], [0], [0], [1], [0, 0, 1, 1], [], []>} : vector<32x32xf32>, vector<32x32xf32>, vector<32x32xf32> -> vector<32x32xf32>
    %25 = arith.addf %24, %22 : vector<32x32xf32>
    %cst_24 = arith.constant 0.000000e+00 : f32
    %26 = vector.broadcast %cst_24 : f32 to vector<32x32xf32>
    %27 = arith.maximumf %25, %26 : vector<32x32xf32>
    %c0_25 = arith.constant 0 : index
    %c0_26 = arith.constant 0 : index
    %28 = vector.load %arg12[%c0_25, %c0_26] : memref<32x32xf32, #tpu.memory_space<vmem>>, vector<32x32xf32>
    %cst_27 = arith.constant dense<0.000000e+00> : vector<32x32xf32>
    %29 = tpu.matmul %27, %28, %cst_27 {dimension_numbers = #tpu.dot_dimension_numbers<[1], [0], [0], [1], [0, 0, 1, 1], [], []>} : vector<32x32xf32>, vector<32x32xf32>, vector<32x32xf32> -> vector<32x32xf32>
    %c0_28 = arith.constant 0 : index
    %c0_29 = arith.constant 0 : index
    %30 = vector.load %arg13[%c0_28, %c0_29] : memref<1x32xf32, #tpu.memory_space<vmem>>, vector<1x32xf32>
    %31 = vector.broadcast %30 : vector<1x32xf32> to vector<32x32xf32>
    %32 = arith.addf %29, %31 : vector<32x32xf32>
    %c0_30 = arith.constant 0 : index
    %c0_31 = arith.constant 0 : index
    %33 = vector.load %arg14[%c0_30, %c0_31] : memref<32x64xf32, #tpu.memory_space<vmem>>, vector<32x64xf32>
    %cst_32 = arith.constant dense<0.000000e+00> : vector<32x64xf32>
    %34 = tpu.matmul %32, %33, %cst_32 {dimension_numbers = #tpu.dot_dimension_numbers<[1], [0], [0], [1], [0, 0, 1, 1], [], []>} : vector<32x32xf32>, vector<32x64xf32>, vector<32x64xf32> -> vector<32x64xf32>
    %c0_33 = arith.constant 0 : index
    %c0_34 = arith.constant 0 : index
    %35 = vector.load %arg15[%c0_33, %c0_34] : memref<1x64xf32, #tpu.memory_space<vmem>>, vector<1x64xf32>
    %36 = vector.broadcast %35 : vector<1x64xf32> to vector<32x64xf32>
    %37 = arith.addf %34, %36 : vector<32x64xf32>
    %cst_35 = arith.constant dense<0xFF800000> : vector<32xf32>
    %38 = vector.multi_reduction <maximumf>, %37, %cst_35 [1] : vector<32x64xf32> to vector<32xf32>
    %39 = vector.shape_cast %38 : vector<32xf32> to vector<32x1xf32>
    %40 = vector.broadcast %39 : vector<32x1xf32> to vector<32x64xf32>
    %41 = arith.subf %37, %40 : vector<32x64xf32>
    %42 = math.exp %41 : vector<32x64xf32>
    %cst_36 = arith.constant dense<0.000000e+00> : vector<32xf32>
    %43 = vector.multi_reduction <add>, %42, %cst_36 [1] : vector<32x64xf32> to vector<32xf32>
    %44 = vector.shape_cast %43 : vector<32xf32> to vector<32x1xf32>
    %45 = math.log %44 : vector<32x1xf32>
    %46 = arith.addf %45, %39 : vector<32x1xf32>
    %47 = arith.mulf %37, %6 : vector<32x64xf32>
    %cst_37 = arith.constant dense<0.000000e+00> : vector<32xf32>
    %48 = vector.multi_reduction <add>, %47, %cst_37 [1] : vector<32x64xf32> to vector<32xf32>
    %49 = vector.shape_cast %48 : vector<32xf32> to vector<32x1xf32>
    %50 = arith.subf %46, %49 : vector<32x1xf32>
    %c0_38 = arith.constant 0 : index
    %c0_39 = arith.constant 0 : index
    %c0_40 = arith.constant 0 : index
    %51 = vector.load %arg2[%c0_38, %c0_39, %c0_40] : memref<1x32x1xf32, #tpu.memory_space<vmem>>, vector<1x32x1xf32>
    %52 = vector.shape_cast %51 : vector<1x32x1xf32> to vector<32x1xf32>
    %c0_41 = arith.constant 0 : index
    %c0_42 = arith.constant 0 : index
    %53 = vector.load %arg3[%c0_41, %c0_42] : memref<32x1xi32, #tpu.memory_space<vmem>>, vector<32x1xi32>
    %54 = tpu.iota {dimensions = array<i32: 1>} : vector<1x128xi32>
    %cst_43 = arith.constant 0.000000e+00 : f32
    %55 = vector.broadcast %cst_43 : f32 to vector<1x128xf32>
    %c0_i32 = arith.constant 0 : i32
    %56 = vector.broadcast %c0_i32 : i32 to vector<32x1xi32>
    %57 = arith.cmpi eq, %53, %56 : vector<32x1xi32>
    %58 = arith.mulf %50, %52 : vector<32x1xf32>
    %cst_44 = arith.constant 0.000000e+00 : f32
    %59 = vector.broadcast %cst_44 : f32 to vector<32x1xf32>
    %60 = arith.select %57, %58, %59 : vector<32x1xi1>, vector<32x1xf32>
    %61 = vector.shape_cast %60 : vector<32x1xf32> to vector<1x32x1xf32>
    %cst_45 = arith.constant dense<0.000000e+00> : vector<1xf32>
    %62 = vector.multi_reduction <add>, %61, %cst_45 [1, 2] : vector<1x32x1xf32> to vector<1xf32>
    %63 = vector.shape_cast %62 : vector<1xf32> to vector<1x1x1xf32>
    %64 = vector.extract %63[0, 0, 0] : f32 from vector<1x1x1xf32>
    %cst_46 = arith.constant 0.000000e+00 : f32
    %65 = vector.broadcast %cst_46 : f32 to vector<32x1xf32>
    %66 = arith.select %57, %52, %65 : vector<32x1xi1>, vector<32x1xf32>
    %67 = vector.shape_cast %66 : vector<32x1xf32> to vector<1x32x1xf32>
    %cst_47 = arith.constant dense<0.000000e+00> : vector<1xf32>
    %68 = vector.multi_reduction <add>, %67, %cst_47 [1, 2] : vector<1x32x1xf32> to vector<1xf32>
    %69 = vector.shape_cast %68 : vector<1xf32> to vector<1x1x1xf32>
    %70 = vector.extract %69[0, 0, 0] : f32 from vector<1x1x1xf32>
    %c0_i32_48 = arith.constant 0 : i32
    %71 = vector.broadcast %c0_i32_48 : i32 to vector<1x128xi32>
    %72 = arith.cmpi eq, %54, %71 : vector<1x128xi32>
    %73 = arith.divf %64, %70 : f32
    %cst_49 = arith.constant 0.000000e+00 : f32
    %74 = vector.broadcast %73 : f32 to vector<1x128xf32>
    %75 = vector.broadcast %cst_49 : f32 to vector<1x128xf32>
    %76 = arith.select %72, %74, %75 : vector<1x128xi1>, vector<1x128xf32>
    %77 = arith.addf %55, %76 : vector<1x128xf32>
    %c1_i32 = arith.constant 1 : i32
    %78 = vector.broadcast %c1_i32 : i32 to vector<32x1xi32>
    %79 = arith.cmpi eq, %53, %78 : vector<32x1xi32>
    %80 = arith.mulf %50, %52 : vector<32x1xf32>
    %cst_50 = arith.constant 0.000000e+00 : f32
    %81 = vector.broadcast %cst_50 : f32 to vector<32x1xf32>
    %82 = arith.select %79, %80, %81 : vector<32x1xi1>, vector<32x1xf32>
    %83 = vector.shape_cast %82 : vector<32x1xf32> to vector<1x32x1xf32>
    %cst_51 = arith.constant dense<0.000000e+00> : vector<1xf32>
    %84 = vector.multi_reduction <add>, %83, %cst_51 [1, 2] : vector<1x32x1xf32> to vector<1xf32>
    %85 = vector.shape_cast %84 : vector<1xf32> to vector<1x1x1xf32>
    %86 = vector.extract %85[0, 0, 0] : f32 from vector<1x1x1xf32>
    %cst_52 = arith.constant 0.000000e+00 : f32
    %87 = vector.broadcast %cst_52 : f32 to vector<32x1xf32>
    %88 = arith.select %79, %52, %87 : vector<32x1xi1>, vector<32x1xf32>
    %89 = vector.shape_cast %88 : vector<32x1xf32> to vector<1x32x1xf32>
    %cst_53 = arith.constant dense<0.000000e+00> : vector<1xf32>
    %90 = vector.multi_reduction <add>, %89, %cst_53 [1, 2] : vector<1x32x1xf32> to vector<1xf32>
    %91 = vector.shape_cast %90 : vector<1xf32> to vector<1x1x1xf32>
    %92 = vector.extract %91[0, 0, 0] : f32 from vector<1x1x1xf32>
    %c1_i32_54 = arith.constant 1 : i32
    %93 = vector.broadcast %c1_i32_54 : i32 to vector<1x128xi32>
    %94 = arith.cmpi eq, %54, %93 : vector<1x128xi32>
    %95 = arith.divf %86, %92 : f32
    %cst_55 = arith.constant 0.000000e+00 : f32
    %96 = vector.broadcast %95 : f32 to vector<1x128xf32>
    %97 = vector.broadcast %cst_55 : f32 to vector<1x128xf32>
    %98 = arith.select %94, %96, %97 : vector<1x128xi1>, vector<1x128xf32>
    %99 = arith.addf %77, %98 : vector<1x128xf32>
    %c0_56 = arith.constant 0 : index
    %c0_57 = arith.constant 0 : index
    %c0_58 = arith.constant 0 : index
    %100 = vector.load %arg16[%c0_56, %c0_57, %c0_58] : memref<1x1x128xf32, #tpu.memory_space<vmem>>, vector<1x1x128xf32>
    %101 = vector.shape_cast %100 : vector<1x1x128xf32> to vector<1x128xf32>
    %102 = vector.shape_cast %99 : vector<1x128xf32> to vector<1x1x128xf32>
    tpu.vector_store %arg16[%c0_56, %c0_57, %c0_58], %102 {strides = array<i32>} : memref<1x1x128xf32, #tpu.memory_space<vmem>>, vector<1x1x128xf32>,
    return
  }
  func.func @transform_0(%arg0: i32) -> (i32, i32, i32) {
    %c0_i32 = arith.constant 0 : i32
    %c0_i32_0 = arith.constant 0 : i32
    %c0_i32_1 = arith.constant 0 : i32
    return %arg0, %c0_i32, %c0_i32_0 : i32, i32, i32
  }
  func.func @transform_1(%arg0: i32) -> (i32, i32, i32) {
    %c0_i32 = arith.constant 0 : i32
    %c0_i32_0 = arith.constant 0 : i32
    %c0_i32_1 = arith.constant 0 : i32
    return %arg0, %c0_i32, %c0_i32_0 : i32, i32, i32
  }
  func.func @transform_2(%arg0: i32) -> (i32, i32) {
    %c0_i32 = arith.constant 0 : i32
    %c0_i32_0 = arith.constant 0 : i32
    %c0_i32_1 = arith.constant 0 : i32
    return %c0_i32, %c0_i32_0 : i32, i32
  }
  func.func @transform_3(%arg0: i32) -> (i32, i32) {
    %c0_i32 = arith.constant 0 : i32
    %c0_i32_0 = arith.constant 0 : i32
    %c0_i32_1 = arith.constant 0 : i32
    return %c0_i32, %c0_i32_0 : i32, i32
  }
  func.func @transform_4(%arg0: i32) -> (i32, i32, i32) {
    %c0_i32 = arith.constant 0 : i32
    %c0_i32_0 = arith.constant 0 : i32
    %c0_i32_1 = arith.constant 0 : i32
    return %arg0, %c0_i32, %c0_i32_0 : i32, i32, i32
  }
  func.func @transform_5(%arg0: i32) -> (i32, i32, i32) {
    %c0_i32 = arith.constant 0 : i32
    %c0_i32_0 = arith.constant 0 : i32
    %c0_i32_1 = arith.constant 0 : i32
    return %arg0, %c0_i32, %c0_i32_0 : i32, i32, i32
  }
  func.func @transform_6(%arg0: i32) -> (i32, i32) {
    %c0_i32 = arith.constant 0 : i32
    %c0_i32_0 = arith.constant 0 : i32
    %c0_i32_1 = arith.constant 0 : i32
    return %c0_i32, %c0_i32_0 : i32, i32
  }
  func.func @transform_7(%arg0: i32) -> (i32, i32) {
    %c0_i32 = arith.constant 0 : i32
    %c0_i32_0 = arith.constant 0 : i32
    %c0_i32_1 = arith.constant 0 : i32
    return %c0_i32, %c0_i32_0 : i32, i32
  }
  func.func @transform_8(%arg0: i32) -> (i32, i32) {
    %c0_i32 = arith.constant 0 : i32
    %c0_i32_0 = arith.constant 0 : i32
    %c0_i32_1 = arith.constant 0 : i32
    return %c0_i32, %c0_i32_0 : i32, i32
  }
  func.func @transform_9(%arg0: i32) -> (i32, i32) {
    %c0_i32 = arith.constant 0 : i32
    %c0_i32_0 = arith.constant 0 : i32
    %c0_i32_1 = arith.constant 0 : i32
    return %c0_i32, %c0_i32_0 : i32, i32
  }
  func.func @transform_10(%arg0: i32) -> (i32, i32) {
    %c0_i32 = arith.constant 0 : i32
    %c0_i32_0 = arith.constant 0 : i32
    %c0_i32_1 = arith.constant 0 : i32
    return %c0_i32, %c0_i32_0 : i32, i32
  }
  func.func @transform_11(%arg0: i32) -> (i32, i32) {
    %c0_i32 = arith.constant 0 : i32
    %c0_i32_0 = arith.constant 0 : i32
    %c0_i32_1 = arith.constant 0 : i32
    return %c0_i32, %c0_i32_0 : i32, i32
  }
  func.func @transform_12(%arg0: i32) -> (i32, i32) {
    %c0_i32 = arith.constant 0 : i32
    %c0_i32_0 = arith.constant 0 : i32
    %c0_i32_1 = arith.constant 0 : i32
    return %c0_i32, %c0_i32_0 : i32, i32
  }
  func.func @transform_13(%arg0: i32) -> (i32, i32) {
    %c0_i32 = arith.constant 0 : i32
    %c0_i32_0 = arith.constant 0 : i32
    %c0_i32_1 = arith.constant 0 : i32
    return %c0_i32, %c0_i32_0 : i32, i32
  }
  func.func @transform_14(%arg0: i32) -> (i32, i32) {
    %c0_i32 = arith.constant 0 : i32
    %c0_i32_0 = arith.constant 0 : i32
    %c0_i32_1 = arith.constant 0 : i32
    return %c0_i32, %c0_i32_0 : i32, i32
  }
  func.func @transform_15(%arg0: i32) -> (i32, i32, i32) {
    %c0_i32 = arith.constant 0 : i32
    %c0_i32_0 = arith.constant 0 : i32
    %c0_i32_1 = arith.constant 0 : i32
    return %arg0, %c0_i32, %c0_i32_0 : i32, i32, i32
  }
}

</mosaic_0001>

<bundles_post_ra>
// kernel: mul.19
= control target key start
LH: loop header
LB: loop body
LE: loop exit
PB: predicated region body
PF: predicated region fallthrough
CT: control target
= control target key end

     0   :  { %s37_s8 = smov 8   ;;  %s38_s9 = smov 16   ;;  %vm7_vm0 = vcmask 64512   ;;  %vm13_vm1 = vcmask 261312   ;;  %vm19_vm2 = vcmask 195712   ;;  %vm25_vm3 = vcmask 130112   ;;  %s55_s0 = inlined_call_operand.vmem [shape: f32[4,8], index: 0, kind: input, shape index: {}]   ;;  %s56_s1 = inlined_call_operand.vmem [shape: f32[32], index: 1, kind: output, shape index: {}]  }
   0x1   :  { %v4_v0 = vld [vmem:[%s55_s0] sm:$0xf]  ;;  %s36_s0 = smov 24  }
   0x2   :  { %5 = vst [vmem:[#allocation1] sm:$0xf] %v4_v0 }
   0x9   :  { %v10_v1 = vld [vmem:[#allocation1 + $0x3] sm:$0x1]   ;;  %v22_v2 = vld [vmem:[#allocation1 + $0x1] sm:$0x1]   ;;  %v16_v3 = vld [vmem:[#allocation1 + $0x2] sm:$0x1]  }
   0xa   :  { %11 = vrot.lane.b32.xlu0 %v10_v1, %s36_s0  ;;  %23 = vrot.lane.b32.xlu1 %v22_v2, %s37_s8  ;;  %v6_v4 = vld [vmem:[#allocation1] sm:$0x1]  }
   0xb   :  { %8 = vst.msk [vmem:[#allocation0] sm:$0x1] %vm7_vm0, %v6_v4  }
  0x12   :  { %17 = vrot.lane.b32.xlu0 %v16_v3, %s38_s9 }
  0x7c   :  { %v12_v5 = vpop.permute.xlu0 %11   ;;  %v24_v6 = vpop.permute.xlu1 %23  }
  0x7d   :  { %14 = vst.msk [vmem:[#allocation0] sm:$0x1] %vm13_vm1, %v12_v5  }
  0x84   :  { %v18_v7 = vpop.permute.xlu0 %17  }
  0x85   :  { %20 = vst.msk [vmem:[#allocation0] sm:$0x1] %vm19_vm2, %v18_v7  }
  0x86   :  { %26 = vst.msk [vmem:[#allocation0] sm:$0x1] %vm25_vm3, %v24_v6  }
  0x8d   :  { %v29_v8 = vld [vmem:[#allocation0] sm:$0x1] }
  0x8e   :  { %32 = vst [vmem:[%s56_s1] sm:$0x1] %v29_v8 }

// kernel: div.1
= control target key start
LH: loop header
LB: loop body
LE: loop exit
PB: predicated region body
PF: predicated region fallthrough
CT: control target
= control target key end

     0   :  { %s50_s0 = inlined_call_operand.vmem [shape: f32[1,32,1], index: 0, kind: input, shape index: {}]   ;;  %s51_s1 = inlined_call_operand.vmem [shape: f32[1,32,1], index: 1, kind: input, shape index: {}]   ;;  %s52_s2 = inlined_call_operand.vmem [shape: f32[1,32,1], index: 2, kind: output, shape index: {}]  }
   0x1   :  { %v4_v0 = vld [vmem:[%s51_s1] sm:$0x1] }
   0x2   :  { %24 = vrcp.f32 %v4_v0  ;;  %v18_v3 = vand.u32 2147483648, %v4_v0  ;;  %vm12_vm0 = vweird.f32 %v4_v0  ;;  %v16_v5 = vand.u32 2147483647, %v4_v0  ;;  %v3_v9 = vld [vmem:[%s50_s0] sm:$0x1] }
   0x4   :  { %v19_v7 = vor.u32 1.1754944e-38, %v18_v3  ;;  %vm17_vm3 = vcmp.eq.f32.partialorder %v16_v5, 8.507059e+37 }
   0x8   :  { %v25_v1 = vpop.eup %24 }
   0x9   :  { %v8_v2 = vmul.f32 %v25_v1, %v4_v0  ;;  %vm13_vm1 = vweird.f32 %v25_v1 }
   0xa   :  { %vm14_vm2 = vmor %vm12_vm0, %vm13_vm1 }
   0xb   :  { %v9_v4 = vsub.f32 1.0, %v8_v2 }
   0xd   :  { %v10_v6 = vmul.f32 %v25_v1, %v9_v4 }
   0xf   :  { %v11_v8 = vadd.f32 %v25_v1, %v10_v6 }
  0x11   :  { %v15_v10 = vsel %vm14_vm2, %v25_v1, %v11_v8 }
  0x12   :  { %v20_v11 = vsel %vm17_vm3, %v19_v7, %v15_v10 }
  0x13   :  { %v21_v12 = vmul.f32 %v20_v11, %v3_v9 }
  0x15   :  { %23 = vst [vmem:[%s52_s2] sm:$0x1] %v21_v12 }

// kernel: vgvae_forward.3
= control target key start
LH: loop header
LB: loop body
LE: loop exit
PB: predicated region body
PF: predicated region fallthrough
CT: control target
= control target key end

     0   :  { %s1020_s0 = inlined_call_operand.vmem [shape: s32[32,1], index: 0, kind: input, shape index: {}]   ;;  %s1021_s1 = inlined_call_operand.vmem [shape: s32[32,1], index: 1, kind: input, shape index: {}]   ;;  %s1022_s2 = inlined_call_operand.vmem [shape: f32[4,32], index: 2, kind: input, shape index: {}]   ;;  %s1023_s3 = inlined_call_operand.vmem [shape: f32[64,32], index: 3, kind: input, shape index: {}]   ;;  %s1024_s4 = inlined_call_operand.vmem [shape: f32[64,32], index: 4, kind: input, shape index: {}]   ;;  %s1025_s5 = inlined_call_operand.vmem [shape: f32[32,64], index: 5, kind: input, shape index: {}]   ;;  %s1026_s6 = inlined_call_operand.vmem [shape: f32[1,64], index: 6, kind: input, shape index: {}, may-alias: {6,10}]   ;;  %s1027_s7 = inlined_call_operand.hbm [shape: f32[64,17], index: 7, kind: input, shape index: {}]   ;;  %s1028_s8 = inlined_call_operand.vmem [shape: f32[1,17], index: 8, kind: input, shape index: {}]   ;;  %s1029_s9 = inlined_call_operand.hbm [shape: f32[32,64], index: 9, kind: input, shape index: {}]   ;;  %s1030_s10 = inlined_call_operand.vmem [shape: f32[1,64], index: 10, kind: input, shape index: {}, may-alias: {6,10}]   ;;  %s1031_s11 = inlined_call_operand.hbm [shape: f32[64,32], index: 11, kind: input, shape index: {}]   ;;  %s1032_s12 = inlined_call_operand.vmem [shape: f32[1,32], index: 12, kind: input, shape index: {}]   ;;  %s1033_s13 = inlined_call_operand.vmem [shape: f32[4,16], index: 13, kind: input, shape index: {}]   ;;  %s1034_s14 = inlined_call_operand.vmem [shape: f32[4,16], index: 14, kind: input, shape index: {}]   ;;  %s1035_s15 = inlined_call_operand.vmem [shape: f32[4,16], index: 15, kind: output, shape index: {0}]   ;;  %s1036_s16 = inlined_call_operand.vmem [shape: f32[4,16], index: 16, kind: output, shape index: {1}]   ;;  %s1037_s17 = inlined_call_operand.vmem [shape: f32[1,128], index: 17, kind: output, shape index: {2}]  }
   0x1   :  { %1040 = sst [smem:[#allocation9_spill]] %s1020_s0 }
   0x2   :  { %1041 = sst [smem:[#allocation10_spill]] %s1021_s1 }
   0x3   :  { %23 = vsyncpa [#allocation3], 0 }
   0x4   :  { %24 = vsyncpa [#allocation5], 0  ;;  %s58_s26 = sshll.u32 %s1029_s9, 4  ;;  %s749_s27 = smov [#allocation4]   ;;  %s59_s26 = int_to_ptr.hbm [resolvable:$true] %s58_s26 }
   0x5   :  { %s60_s28 = sshll.u32 %s749_s27, 4  ;;  %s43_s30 = sshll.u32 %s1027_s7, 4  ;;  %s61_s28 = int_to_ptr.vmem [resolvable:$true] %s60_s28  ;;  %s44_s30 = int_to_ptr.hbm [resolvable:$true] %s43_s30 }
   0x6   :  { %s750_s18 = smov 128   ;;  %s751_s19 = smov 8  }
   0x7   :  { %66 = dma.hbm_to_vmem [thread:$0]  %s59_s26, 512, %s61_s28, [#allocation5], %s750_s18, %s750_s18, %s751_s19  }
   0x8   :  { %s752_s1 = smov [#allocation2]   ;;  %s73_s23 = sshll.u32 %s1031_s11, 4  ;;  %s74_s23 = int_to_ptr.hbm [resolvable:$true] %s73_s23 }
   0x9   :  { %s45_s20 = sshll.u32 %s752_s1, 4  ;;  %s753_s9 = smov [#allocation6]   ;;  %s46_s20 = int_to_ptr.vmem [resolvable:$true] %s45_s20 }
   0xa   :  { %51 = dma.hbm_to_vmem [thread:$0]  %s44_s30, 1024, %s46_s20, [#allocation3], %s750_s18, %s750_s18, %s751_s19  }
   0xb   :  { %s75_s24 = sshll.u32 %s753_s9, 4  ;;  %s76_s24 = int_to_ptr.vmem [resolvable:$true] %s75_s24 }
   0xc   :  { %81 = dma.hbm_to_vmem [thread:$0]  %s74_s23, 1024, %s76_s24, [#allocation5], %s750_s18, %s750_s18, %s751_s19  }
   0xd   :  { %745 = dma.done.wait [#allocation3], 1024  }
   0xe   :  { %746 = vsyncadd [#allocation3], 4294966272 }
   0xf   :  { %747 = dma.done.wait [#allocation5], 1536  }
  0x10   :  { %748 = vsyncadd [#allocation5], 4294965760  ;;  %v754_v0 = vmov 0   ;;  %s1042_s26 = sld [smem:[#allocation10_spill]]  ;;  %v190_v9 = vld [vmem:[%s1023_s3 + $0x38] sm:$0xff]  ;;  %v189_v10 = vld [vmem:[%s1023_s3 + $0x30] sm:$0xff]  ;;  %v100_v15 = vlaneseq }
  0x11   :  { %643 = vset.pattern.permute.xlu1 %v754_v0  ;;  %642 = vset.pattern.permute.xlu0 %v754_v0  ;;  %s1043_s28 = sld [smem:[#allocation9_spill]]  ;;  %v242_v11 = vld [vmem:[%s1024_s4 + $0x38] sm:$0xff]  ;;  %v241_v12 = vld [vmem:[%s1024_s4 + $0x30] sm:$0xff]  ;;  %v188_v13 = vld [vmem:[%s1023_s3 + $0x28] sm:$0xff]  ;;  %v755_v27 = vmov 1.0   ;;  %vm159_vm5 = vcmask 261120  }
  0x12   :  { %644 = vset.pattern.permute.xlu2 %v754_v0  ;;  %203 = vmatpush.msra.mxu1 %v190_v9  ;;  %v240_v14 = vld [vmem:[%s1024_s4 + $0x28] sm:$0xff]  ;;  %v187_v16 = vld [vmem:[%s1023_s3 + $0x20] sm:$0xff]  ;;  %v186_v18 = vld [vmem:[%s1023_s3 + $0x18] sm:$0xff]  ;;  %v913_v20 = vand.u32 127, %v100_v15  ;;  %vm191_vm9 = vcmask 523264   ;;  %vm334_vm10 = vcmask 125952  }
  0x13   :  { %254 = vmatpush.msra.mxu3 %v242_v11  ;;  %v239_v17 = vld [vmem:[%s1024_s4 + $0x20] sm:$0xff]  ;;  %v238_v19 = vld [vmem:[%s1024_s4 + $0x18] sm:$0xff]  ;;  %v185_v21 = vld [vmem:[%s1023_s3 + $0x10] sm:$0xff]  ;;  %s757_s18 = smov 112   ;;  %vm558_vm13 = vcmask 3072  }
  0x14   :  { %204 = vmatpush.msra.mxu1 %v189_v10  ;;  %v237_v22 = vld [vmem:[%s1024_s4 + $0x10] sm:$0xff]  ;;  %v184_v26 = vld [vmem:[%s1023_s3 + $0x8] sm:$0xff]  ;;  %v158_v31 = vld [vmem:[%s1022_s2] sm:$0xf] }
  0x15   :  { %255 = vmatpush.msra.mxu3 %v241_v12  ;;  %v183_v34 = vld [vmem:[%s1023_s3] sm:$0xff]  ;;  %v236_v35 = vld [vmem:[%s1024_s4 + $0x8] sm:$0xff]  ;;  %v269_v37 = vld [vmem:[%s1025_s5 + $0x18] sm:$0xff] }
  0x16   :  { %v133_v1 = vld [vmem:[%s1042_s26 + $0x18] sm:$0xff]  ;;  %v132_v4 = vld [vmem:[%s1042_s26 + $0x10] sm:$0xff]  ;;  %v131_v5 = vld [vmem:[%s1042_s26 + $0x8] sm:$0xff]  ;;  %205 = vmatpush.msra.mxu1 %v188_v13 }
  0x17   :  { %v105_v2 = vld [vmem:[%s1043_s28 + $0x18] sm:$0xff]  ;;  %144 = vperm.xlu0 %642, %v133_v1   ;;  %v104_v3 = vld [vmem:[%s1043_s28 + $0x10] sm:$0xff]  ;;  %v130_v6 = vld [vmem:[%s1042_s26] sm:$0xff]  ;;  %256 = vmatpush.msra.mxu3 %v240_v14 }
  0x18   :  { %116 = vperm.xlu1 %643, %v105_v2   ;;  %113 = vperm.xlu2 %644, %v104_v3   ;;  %v103_v7 = vld [vmem:[%s1043_s28 + $0x8] sm:$0xff]  ;;  %v102_v8 = vld [vmem:[%s1043_s28] sm:$0xff]  ;;  %v268_v38 = vld [vmem:[%s1025_s5 + $0x10] sm:$0xff] }
  0x19   :  { %206 = vmatpush.msra.mxu1 %v187_v16  ;;  %257 = vmatpush.msra.mxu3 %v239_v17  ;;  %v235_v36 = vld [vmem:[%s1024_s4] sm:$0xff]  ;;  %v267_v39 = vld [vmem:[%s1025_s5 + $0x8] sm:$0xff]  ;;  %v374_v43 = vld [vmem:[#allocation4 + $0x18] sm:$0xff] }
  0x1a   :  { %v266_v40 = vld [vmem:[%s1025_s5] sm:$0xff]  ;;  %v373_v44 = vld [vmem:[#allocation4 + $0x10] sm:$0xff]  ;;  %v372_v45 = vld [vmem:[#allocation4 + $0x8] sm:$0xff] }
  0x1b   :  { %207 = vmatpush.msra.mxu1 %v186_v18  ;;  %258 = vmatpush.msra.mxu3 %v238_v19  ;;  %v371_v46 = vld [vmem:[#allocation4] sm:$0xff]  ;;  %v305_v47 = vld [vmem:[#allocation2 + $0x38] sm:$0xff]  ;;  %v304_v48 = vld [vmem:[#allocation2 + $0x30] sm:$0xff] }
  0x1c   :  { %v410_v49 = vld [vmem:[#allocation6 + $0x38] sm:$0xff]  ;;  %v303_v50 = vld [vmem:[#allocation2 + $0x28] sm:$0xff]  ;;  %v302_v51 = vld [vmem:[#allocation2 + $0x20] sm:$0xff] }
  0x1d   :  { %208 = vmatpush.msra.mxu1 %v185_v21  ;;  %259 = vmatpush.msra.mxu3 %v237_v22  ;;  %v301_v52 = vld [vmem:[#allocation2 + $0x18] sm:$0xff]  ;;  %v300_v55 = vld [vmem:[#allocation2 + $0x10] sm:$0xff]  ;;  %v299_v57 = vld [vmem:[#allocation2 + $0x8] sm:$0xff] }
  0x1e   :  { %v409_v56 = vld [vmem:[#allocation6 + $0x30] sm:$0xff]  ;;  %v408_v58 = vld [vmem:[#allocation6 + $0x28] sm:$0xff]  ;;  %v298_v59 = vld [vmem:[#allocation2] sm:$0xff] }
  0x1f   :  { %141 = vperm.xlu0 %642, %v132_v4   ;;  %209 = vmatpush.msra.mxu1 %v184_v26  ;;  %v407_v60 = vld [vmem:[#allocation6 + $0x20] sm:$0xff]  ;;  %v406_v61 = vld [vmem:[#allocation6 + $0x18] sm:$0xff]  ;;  %v405_v62 = vld [vmem:[#allocation6 + $0x10] sm:$0xff] }
  0x20   :  { %138 = vperm.xlu1 %643, %v131_v5   ;;  %135 = vperm.xlu2 %644, %v130_v6   ;;  %v404_v63 = vld [vmem:[#allocation6 + $0x8] sm:$0xff]  ;;  %v403_v0 = vld [vmem:[#allocation6] sm:$0xff] }
  0x21   :  { %210 = vmatpush.msra.mxu1 %v183_v34  ;;  %260 = vmatpush.msra.mxu3 %v236_v35  ;;  %v647_v1 = vld [vmem:[%s1026_s6] ss:$0 sm:$0xff] }
  0x22   :  { %v648_v5 = vld [vmem:[%s1030_s10] ss:$0 sm:$0xff] }
  0x23   :  { %261 = vmatpush.msra.mxu3 %v235_v36  ;;  %426 = vmatpush.msrb.mxu1 %v410_v49  ;;  %v649_v9 = vld [vmem:[%s1028_s8] ss:$0 sm:$0xff]  ;;  %s756_s8 = smov 16  }
  0x24   :  { %v650_v10 = vld [vmem:[%s1032_s12] ss:$0 sm:$0xff] }
  0x25   :  { %427 = vmatpush.msrb.mxu1 %v409_v56 }
  0x27   :  { %110 = vperm.xlu0 %642, %v103_v7   ;;  %428 = vmatpush.msrb.mxu1 %v408_v58 }
  0x28   :  { %107 = vperm.xlu1 %643, %v102_v8  }
  0x29   :  { %429 = vmatpush.msrb.mxu1 %v407_v60 }
  0x2b   :  { %430 = vmatpush.msrb.mxu1 %v406_v61 }
  0x2d   :  { %431 = vmatpush.msrb.mxu1 %v405_v62 }
  0x2f   :  { %432 = vmatpush.msrb.mxu1 %v404_v63 }
  0x31   :  { %433 = vmatpush.msrb.mxu1 %v403_v0 }
  0x72   :  { %v114_v23 = vpop.permute.xlu2 %113 }
  0x73   :  { %vm120_vm0 = vcmp.eq.s32.totalorder %v114_v23, %v913_v20 }
  0x7a   :  { %v136_v30 = vpop.permute.xlu2 %135 }
  0x7b   :  { %vm146_vm6 = vcmp.eq.s32.totalorder %v136_v30, %v913_v20 }
  0x89   :  { %v145_v24 = vpop.permute.xlu0 %144 }
  0x8a   :  { %v117_v25 = vpop.permute.xlu1 %116  ;;  %vm149_vm1 = vcmp.eq.s32.totalorder %v145_v24, %v913_v20 }
  0x8b   :  { %vm121_vm2 = vcmp.eq.s32.totalorder %v117_v25, %v913_v20  ;;  %614 = vmatpush.msk.msra.mxu2 %vm149_vm1, %v755_v27  ;;  %v441_v25 = vld [vmem:[%s1033_s13] sm:$0xf] }
  0x8c   :  { %608 = vmatpush.msk.msra.mxu0 %vm121_vm2, %v755_v27 }
  0x8e   :  { %609 = vmatpush.msk.msra.mxu0 %vm120_vm0, %v755_v27 }
  0x91   :  { %v142_v28 = vpop.permute.xlu0 %141 }
  0x92   :  { %v139_v29 = vpop.permute.xlu1 %138  ;;  %vm148_vm3 = vcmp.eq.s32.totalorder %v142_v28, %v913_v20 }
  0x93   :  { %615 = vmatpush.msk.msra.mxu2 %vm148_vm3, %v755_v27  ;;  %vm147_vm4 = vcmp.eq.s32.totalorder %v139_v29, %v913_v20 }
  0x95   :  { %616 = vmatpush.msk.msra.mxu2 %vm147_vm4, %v755_v27 }
  0x97   :  { %617 = vmatpush.msk.msra.mxu2 %vm146_vm6, %v755_v27 }
  0x98   :  { %618 = vmatmul.msk.f32.vlgmr.msra.gmra.mxu2 %vm159_vm5, %v158_v31 }
  0x99   :  { %v111_v32 = vpop.permute.xlu0 %110  ;;  %321 = vmatpush.msrb.mxu2 %v305_v47 }
  0x9a   :  { %v108_v33 = vpop.permute.xlu1 %107  ;;  %vm119_vm7 = vcmp.eq.s32.totalorder %v111_v32, %v913_v20 }
  0x9b   :  { %610 = vmatpush.msk.msra.mxu0 %vm119_vm7, %v755_v27  ;;  %vm118_vm8 = vcmp.eq.s32.totalorder %v108_v33, %v913_v20  ;;  %322 = vmatpush.msrb.mxu2 %v304_v48 }
  0x9d   :  { %611 = vmatpush.msk.msra.mxu0 %vm118_vm8, %v755_v27  ;;  %323 = vmatpush.msrb.mxu2 %v303_v50  ;;  %v758_v27 = vmov 16  }
  0x9e   :  { %612 = vmatmul.msk.f32.vlgmr.msra.gmra.mxu0 %vm159_vm5, %v158_v31  ;;  %645 = vset.pattern.permute.xlu1 %v758_v27 }
  0x9f   :  { %289 = vmatpush.msrb.mxu0 %v269_v37  ;;  %324 = vmatpush.msrb.mxu2 %v302_v51 }
  0xa0   :  { %646 = vset.pattern.permute.xlu0 %v758_v27 }
  0xa1   :  { %290 = vmatpush.msrb.mxu0 %v268_v38  ;;  %325 = vmatpush.msrb.mxu2 %v301_v52 }
  0xa3   :  { %291 = vmatpush.msrb.mxu0 %v267_v39  ;;  %326 = vmatpush.msrb.mxu2 %v300_v55 }
  0xa5   :  { %292 = vmatpush.msrb.mxu0 %v266_v40  ;;  %327 = vmatpush.msrb.mxu2 %v299_v57 }
  0xa7   :  { %394 = vmatpush.msra.mxu0 %v374_v43  ;;  %328 = vmatpush.msrb.mxu2 %v298_v59 }
  0xa9   :  { %395 = vmatpush.msra.mxu0 %v373_v44 }
  0xab   :  { %396 = vmatpush.msra.mxu0 %v372_v45 }
  0xad   :  { %397 = vmatpush.msra.mxu0 %v371_v46 }
 0x11b   :  { %v180_v41 = vpop.f32.mrf.mxu0  ;;  %v232_v42 = vpop.f32.mrf.mxu2 }
 0x11c   :  { %613 = vmatmul.msk.f32.vlgmr.msra.gmra.mxu1 %vm191_vm9, %v180_v41  ;;  %619 = vmatmul.msk.f32.vlgmr.msra.gmra.mxu3 %vm191_vm9, %v232_v42 }
 0x199   :  { %v212_v53 = vpop.f32.mrf.mxu1 }
 0x19a   :  { %620 = vmatmul.msk.f32.vlgmr.msrb.gmra.mxu0 %vm159_vm5, %v212_v53 }
 0x19f   :  { %v263_v54 = vpop.f32.mrf.mxu3 }
 0x1a2   :  { %622 = vmatmul.msk.f32.vlgmr.msra.gmra.mxu0 %vm159_vm5, %v263_v54 }
 0x217   :  { %v294_v2 = vpop.f32.mrf.mxu0 }
 0x218   :  { %v295_v3 = vadd.f32 %v647_v1, %v294_v2 }
 0x21a   :  { %v297_v4 = vmax.f32 %v295_v3, 0.0 }
 0x21c   :  { %621 = vmatmul.msk.f32.vlgmr.msrb.gmra.mxu2 %vm191_vm9, %v297_v4 }
 0x21f   :  { %v399_v6 = vpop.f32.mrf.mxu0 }
 0x220   :  { %v400_v7 = vadd.f32 %v648_v5, %v399_v6 }
 0x222   :  { %v402_v8 = vmax.f32 %v400_v7, 0.0 }
 0x224   :  { %623 = vmatmul.msk.f32.vlgmr.msrb.gmra.mxu1 %vm191_vm9, %v402_v8 }
 0x29f   :  { %v330_v11 = vpop.f32.mrf.mxu2 }
 0x2a0   :  { %v976_v12 = vadd.f32 %v649_v9, %v330_v11 }
 0x2a1   :  { %v435_v13 = vpop.f32.mrf.mxu1 }
 0x2a2   :  { %v365_v14 = vmul.f32 1.442695, %v976_v12  ;;  %v979_v15 = vadd.f32 %v650_v10, %v435_v13  ;;  %v333_v16 = vmul.f32 %v976_v12, %v976_v12 }
 0x2a4   :  { %651 = vpow2.f32 %v365_v14  ;;  %v335_v17 = vsel %vm334_vm10, %v333_v16, 0.0  ;;  %v520_v18 = vmul.f32 %v979_v15, %v979_v15  ;;  %v526_v31 = vmul.f32 1.442695, %v979_v15 }
 0x2a5   :  { %336 = vadd.xlane.f32.xlu0 %v335_v17  ;;  %v519_v33 = vadd.f32 1.0, %v979_v15  ;;  %v453_v17 = vld [vmem:[%s1034_s14] sm:$0xf] }
 0x2a6   :  { %522 = vrot.lane.b32.xlu2 %v520_v18, %s756_s8 }
 0x2aa   :  { %v652_v19 = vpop.eup %651 }
 0x2ab   :  { %v367_v21 = vadd.f32 1.0, %v652_v19 }
 0x2ad   :  { %653 = vlog2.f32 %v367_v21 }
 0x2b3   :  { %v654_v22 = vpop.eup %653 }
 0x2b4   :  { %v369_v23 = vmul.f32 0.6931472, %v654_v22 }
 0x2b6   :  { %v370_v24 = vadd.f32 1.0, %v369_v23 }
 0x2b8   :  { %v624_v26 = vadd.f32 -1.0, %v370_v24  ;;  %655 = vrsqrt.f32 %v370_v24  ;;  %vm461_vm11 = vcmp.eq.f32.partialorder %v370_v24, inf  ;;  %v464_v43 = vand.u32 2147483648, %v370_v24 }
 0x2b9   :  { %443 = vrot.lane.b32.xlu0 %v441_v25, %s756_s8  ;;  %657 = vpow2.f32 %v526_v31  ;;  %vm463_vm12 = vcmp.eq.f32.partialorder %v370_v24, 0.0  ;;  %v759_v31 = vmov 2.0  }
 0x2ba   :  { %555 = vrot.lane.b32.xlu2 %v624_v26, %s757_s18  ;;  %v438_v26 = vmul.f32 0.5, %v979_v15 }
 0x2bc   :  { %v439_v27 = vmul.f32 1.442695, %v438_v26 }
 0x2be   :  { %v656_v28 = vpop.eup %655 }
 0x2bf   :  { %v455_v29 = vmul.f32 %v656_v28, %v370_v24  ;;  %v658_v37 = vpop.eup %657 }
 0x2c1   :  { %v456_v30 = vmul.f32 %v656_v28, %v455_v29 }
 0x2c3   :  { %v457_v32 = vmul.f32 0.5, %v456_v30 }
 0x2c5   :  { %v458_v34 = vsub.f32 1.5, %v457_v32 }
 0x2c7   :  { %v459_v39 = vmul.f32 %v656_v28, %v458_v34 }
 0x2c9   :  { %v460_v41 = vmul.f32 %v459_v39, %v370_v24 }
 0x2cb   :  { %v462_v42 = vsel %vm461_vm11, %v370_v24, %v460_v41 }
 0x2cc   :  { %v465_v44 = vsel %vm463_vm12, %v464_v43, %v462_v42 }
 0x300   :  { %v523_v35 = vpop.permute.xlu2 %522 }
 0x301   :  { %v525_v36 = vsub.f32 %v519_v33, %v523_v35 }
 0x303   :  { %v528_v38 = vsub.f32 %v525_v36, %v658_v37 }
 0x305   :  { %v529_v40 = vmul.f32 -0.5, %v528_v38 }
 0x307   :  { %531 = vrot.lane.b32.xlu1 %v529_v40, %s757_s18 }
 0x30f   :  { %468 = vperm.xlu1 %645, %v465_v44  }
 0x314   :  { %v556_v45 = vpop.permute.xlu2 %555 }
 0x315   :  { %v559_v46 = vsel %vm558_vm13, %v556_v45, 0.0  ;;  %vm581_vm13 = vcmp.eq.s32.totalorder %v913_v20, 1 }
 0x318   :  { %v337_v47 = vpop.xlane.xlu0 %336 }
 0x319   :  { %659 = vrsqrt.f32 %v337_v47  ;;  %vm345_vm14 = vcmp.eq.f32.partialorder %v337_v47, inf  ;;  %v348_v56 = vand.u32 2147483648, %v337_v47  ;;  %vm347_vm15 = vcmp.eq.f32.partialorder %v337_v47, 0.0 }
 0x31f   :  { %v660_v48 = vpop.eup %659 }
 0x320   :  { %v339_v49 = vmul.f32 %v660_v48, %v337_v47 }
 0x322   :  { %v340_v50 = vmul.f32 %v660_v48, %v339_v49 }
 0x324   :  { %v341_v51 = vmul.f32 0.5, %v340_v50 }
 0x326   :  { %v342_v52 = vsub.f32 1.5, %v341_v51 }
 0x328   :  { %v343_v53 = vmul.f32 %v660_v48, %v342_v52 }
 0x32a   :  { %v344_v54 = vmul.f32 %v343_v53, %v337_v47 }
 0x32b   :  { %v444_v28 = vpop.permute.xlu0 %443 }
 0x32c   :  { %v346_v55 = vsel %vm345_vm14, %v337_v47, %v344_v54  ;;  %vm578_vm14 = vcmp.eq.s32.totalorder %v913_v20, 0 }
 0x32d   :  { %v349_v57 = vsel %vm347_vm15, %v348_v56, %v346_v55 }
 0x32e   :  { %661 = vrcp.f32 %v349_v57  ;;  %v361_v4 = vand.u32 2147483648, %v349_v57  ;;  %vm355_vm1 = vweird.f32 %v349_v57  ;;  %v359_v6 = vand.u32 2147483647, %v349_v57 }
 0x330   :  { %v362_v11 = vor.u32 1.1754944e-38, %v361_v4  ;;  %vm360_vm5 = vcmp.eq.f32.partialorder %v359_v6, 8.507059e+37 }
 0x334   :  { %v662_v59 = vpop.eup %661 }
 0x335   :  { %v351_v61 = vmul.f32 %v662_v59, %v349_v57  ;;  %vm356_vm0 = vweird.f32 %v662_v59 }
 0x336   :  { %vm357_vm2 = vmor %vm355_vm1, %vm356_vm0 }
 0x337   :  { %v352_v63 = vsub.f32 1.0, %v351_v61 }
 0x339   :  { %560 = vadd.xlane.f32.xlu1 %v559_v46  ;;  %v353_v0 = vmul.f32 %v662_v59, %v352_v63 }
 0x33b   :  { %v354_v3 = vadd.f32 %v662_v59, %v353_v0 }
 0x33d   :  { %v358_v10 = vsel %vm357_vm2, %v662_v59, %v354_v3 }
 0x33e   :  { %v363_v16 = vsel %vm360_vm5, %v362_v11, %v358_v10 }
 0x33f   :  { %v364_v21 = vmul.f32 %v363_v16, %v976_v12 }
 0x379   :  { %v532_v58 = vpop.permute.xlu1 %531 }
 0x37a   :  { %v534_v60 = vsel %vm334_vm10, %v532_v58, 0.0 }
 0x37b   :  { %535 = vadd.xlane.f32.xlu2 %v534_v60 }
 0x381   :  { %v469_v62 = vpop.permute.xlu1 %468 }
 0x382   :  { %663 = vrcp.f32 %v469_v62  ;;  %v482_v7 = vand.u32 2147483648, %v469_v62  ;;  %v480_v9 = vand.u32 2147483647, %v469_v62  ;;  %vm476_vm4 = vweird.f32 %v469_v62 }
 0x383   :  { %665 = vpow2.f32 %v439_v27 }
 0x384   :  { %v483_v14 = vor.u32 1.1754944e-38, %v482_v7  ;;  %vm481_vm7 = vcmp.eq.f32.partialorder %v480_v9, 8.507059e+37  ;;  %667 = vrcp.f32 %v759_v31 }
 0x388   :  { %v664_v1 = vpop.eup %663 }
 0x389   :  { %v472_v2 = vmul.f32 %v664_v1, %v469_v62  ;;  %vm477_vm3 = vweird.f32 %v664_v1  ;;  %v666_v29 = vpop.eup %665 }
 0x38a   :  { %vm478_vm6 = vmor %vm476_vm4, %vm477_vm3  ;;  %v446_v30 = vmul.f32 %v666_v29, %v444_v28  ;;  %v668_v32 = vpop.eup %667 }
 0x38b   :  { %v473_v5 = vsub.f32 1.0, %v472_v2  ;;  %v545_v34 = vmul.f32 2.0, %v668_v32  ;;  %vm549_vm8 = vweird.f32 %v668_v32 }
 0x38d   :  { %v474_v8 = vmul.f32 %v664_v1, %v473_v5  ;;  %v546_v36 = vsub.f32 1.0, %v545_v34 }
 0x38f   :  { %v475_v13 = vadd.f32 %v664_v1, %v474_v8  ;;  %v547_v41 = vmul.f32 %v668_v32, %v546_v36 }
 0x391   :  { %v479_v18 = vsel %vm478_vm6, %v664_v1, %v475_v13  ;;  %v548_v45 = vadd.f32 %v668_v32, %v547_v41 }
 0x392   :  { %v484_v19 = vsel %vm481_vm7, %v483_v14, %v479_v18 }
 0x393   :  { %v485_v22 = vmul.f32 %v484_v19, %v453_v17  ;;  %v550_v49 = vsel %vm549_vm8, %v668_v32, %v548_v45 }
 0x395   :  { %v998_v23 = vadd.f32 %v485_v22, %v364_v21 }
 0x397   :  { %v487_v24 = vmul.f32 %v998_v23, %v998_v23 }
 0x399   :  { %v488_v25 = vsel %vm334_vm10, %v487_v24, 0.0 }
 0x39a   :  { %489 = vadd.xlane.f32.xlu2 %v488_v25 }
 0x3ac   :  { %v561_v12 = vpop.xlane.xlu1 %560 }
 0x3ad   :  { %v562_v33 = vrot.slane %v561_v12, 4 }
 0x3af   :  { %v563_v35 = vadd.f32 %v562_v33, %v561_v12 }
 0x3b1   :  { %v564_v38 = vrot.slane %v563_v35, 2 }
 0x3b2   :  { %448 = vrot.lane.b32.xlu2 %v446_v30, %s757_s18 }
 0x3b3   :  { %v565_v42 = vadd.f32 %v564_v38, %v563_v35 }
 0x3b5   :  { %v566_v47 = vrot.slane %v565_v42, 1 }
 0x3b7   :  { %v567_v50 = vadd.f32 %v566_v47, %v565_v42 }
 0x3ee   :  { %v536_v37 = vpop.xlane.xlu2 %535 }
 0x3ef   :  { %v537_v39 = vrot.slane %v536_v37, 4 }
 0x3f1   :  { %v538_v40 = vadd.f32 %v537_v39, %v536_v37 }
 0x3f3   :  { %v539_v43 = vrot.slane %v538_v40, 2 }
 0x3f5   :  { %v540_v44 = vadd.f32 %v539_v43, %v538_v40 }
 0x3f7   :  { %v541_v46 = vrot.slane %v540_v44, 1 }
 0x3f9   :  { %v542_v48 = vadd.f32 %v541_v46, %v540_v44 }
 0x3fb   :  { %625 = vpush %v542_v48 }
 0x3fc   :  { %627 = vpush %v550_v49 }
 0x3fd   :  { %629 = vpush %v567_v50 }
 0x40d   :  { %v490_v51 = vpop.xlane.xlu2 %489 }
 0x40e   :  { %669 = vrsqrt.f32 %v490_v51  ;;  %vm498_vm9 = vcmp.eq.f32.partialorder %v490_v51, inf  ;;  %v501_v61 = vand.u32 2147483648, %v490_v51  ;;  %vm500_vm11 = vcmp.eq.f32.partialorder %v490_v51, 0.0 }
 0x414   :  { %v670_v52 = vpop.eup %669 }
 0x415   :  { %v492_v53 = vmul.f32 %v670_v52, %v490_v51  ;;  %v449_v54 = vpop.permute.xlu2 %448 }
 0x416   :  { %v451_v55 = vadd.f32 %v449_v54, %v979_v15 }
 0x417   :  { %v493_v56 = vmul.f32 %v670_v52, %v492_v53 }
 0x418   :  { %452 = vst.msk [vmem:[%s1036_s16] sm:$0xf] %vm334_vm10, %v451_v55 }
 0x419   :  { %v494_v57 = vmul.f32 0.5, %v493_v56 }
 0x41b   :  { %v495_v58 = vsub.f32 1.5, %v494_v57 }
 0x41d   :  { %v496_v59 = vmul.f32 %v670_v52, %v495_v58 }
 0x41f   :  { %v497_v60 = vmul.f32 %v496_v59, %v490_v51 }
 0x421   :  { %v499_v62 = vsel %vm498_vm9, %v490_v51, %v497_v60 }
 0x422   :  { %v502_v63 = vsel %vm500_vm11, %v501_v61, %v499_v62 }
 0x423   :  { %671 = vrcp.f32 %v502_v63  ;;  %v514_v15 = vand.u32 2147483648, %v502_v63  ;;  %v512_v4 = vand.u32 2147483647, %v502_v63  ;;  %vm508_vm15 = vweird.f32 %v502_v63 }
 0x425   :  { %v515_v7 = vor.u32 1.1754944e-38, %v514_v15  ;;  %vm513_vm1 = vcmp.eq.f32.partialorder %v512_v4, 8.507059e+37 }
 0x429   :  { %v672_v0 = vpop.eup %671 }
 0x42a   :  { %v504_v1 = vmul.f32 %v672_v0, %v502_v63  ;;  %vm509_vm12 = vweird.f32 %v672_v0 }
 0x42b   :  { %vm510_vm0 = vmor %vm508_vm15, %vm509_vm12 }
 0x42c   :  { %v505_v2 = vsub.f32 1.0, %v504_v1  ;;  %s626_s2 = spop %625 }
 0x42d   :  { %s628_s20 = spop %627 }
 0x42e   :  { %v506_v3 = vmul.f32 %v672_v0, %v505_v2  ;;  %s552_s16 = smul.f32 %s628_s20, %s626_s2  ;;  %s630_s21 = spop %629 }
 0x42f   :  { %s577_s22 = smul.f32 %s630_s21, %s628_s20 }
 0x430   :  { %v507_v5 = vadd.f32 %v672_v0, %v506_v3  ;;  %v582_v6 = vstv %s552_s16 }
 0x431   :  { %v583_v8 = vsel %vm581_vm13, %v582_v6, 0.0  ;;  %v579_v9 = vstv %s577_s22 }
 0x432   :  { %v511_v10 = vsel %vm510_vm0, %v672_v0, %v507_v5  ;;  %v580_v11 = vsel %vm578_vm14, %v579_v9, 0.0 }
 0x433   :  { %v516_v13 = vsel %vm513_vm1, %v515_v7, %v511_v10  ;;  %v584_v14 = vadd.f32 %v583_v8, %v580_v11 }
 0x434   :  { %v517_v16 = vmul.f32 %v516_v13, %v998_v23 }
 0x435   :  { %585 = vst [vmem:[%s1037_s17] sm:$0x1] %v584_v14 }
 0x436   :  { %518 = vst.msk [vmem:[%s1035_s15] sm:$0xf] %vm334_vm10, %v517_v16 }
 0x437   :  { %598 = vsyncpa [#allocation3], 1 }
 0x438   :  { %599 = vsyncpa [#allocation5], 1 }

// kernel: vgvae_forward.5
= control target key start
LH: loop header
LB: loop body
LE: loop exit
PB: predicated region body
PF: predicated region fallthrough
CT: control target
= control target key end

     0   :  { %s1344_s21 = smov 0   ;;  %s1473_s0 = inlined_call_operand.vmem [shape: s32[2,32,1], index: 0, kind: input, shape index: {}]   ;;  %s1474_s1 = inlined_call_operand.vmem [shape: f32[2,32,1], index: 1, kind: input, shape index: {}]   ;;  %s1475_s2 = inlined_call_operand.vmem [shape: f32[2,4,32], index: 2, kind: input, shape index: {}]   ;;  %s1476_s3 = inlined_call_operand.vmem [shape: f32[2,4,16], index: 3, kind: input, shape index: {}]   ;;  %s1477_s4 = inlined_call_operand.vmem [shape: f32[2,64,32], index: 4, kind: input, shape index: {}]   ;;  %s1478_s5 = inlined_call_operand.vmem [shape: f32[2,32,32], index: 5, kind: input, shape index: {}]   ;;  %s1479_s6 = inlined_call_operand.vmem [shape: f32[2,16,32], index: 6, kind: input, shape index: {}]   ;;  %s1480_s7 = inlined_call_operand.vmem [shape: f32[2,1,32], index: 7, kind: input, shape index: {}, may-alias: {7,9}]   ;;  %s1481_s8 = inlined_call_operand.vmem [shape: f32[2,32,32], index: 8, kind: input, shape index: {}]   ;;  %s1482_s9 = inlined_call_operand.vmem [shape: f32[2,1,32], index: 9, kind: input, shape index: {}, may-alias: {7,9}]   ;;  %s1483_s10 = inlined_call_operand.vmem [shape: f32[32,4], index: 10, kind: input, shape index: {}]   ;;  %s1484_s11 = inlined_call_operand.vmem [shape: f32[32,32], index: 11, kind: input, shape index: {}]   ;;  %s1485_s12 = inlined_call_operand.vmem [shape: f32[2,1,128], index: 12, kind: output, shape index: {}]  }
   0x1 LB: > { %s1160_s22 = sadd.s32 4294967295, %s1274_s21   ;;  %p1164_p0 = scmp.ge.s32.totalorder %s1274_s21, 1  ;;  %s1274_s21 = sphi %s1344_s21, %s22_s21  }
   0x2   : > { %p446_p1 = scmp.lt.s32.totalorder %s1274_s21, 3 }
   0x4   : > { %p447_p2 = pnand %p1164_p0, %p446_p1 }
   0x5   : > { %p525_p3 = scmp.lt.s32.totalorder (!%p447_p2), %s1160_s22, 1 }
   0x6   : > { %450 = sbr.rel (%p447_p2) target bundleno = 1018 (0x3fa), region = 68 }
   0xb   : > { %v1276_v0 = vmov 0   ;;  %s1487_s22 = smov (!%p525_p3, %s1160_s22), 1  ;;  %vm659_vm0 = vcmask 130048   ;;  %v572_v16 = vlaneseq  ;;  %vm610_vm1 = vcmask 523264   ;;  %v685_v28 = vld [vmem:[%s1483_s10 + $0x10] sm:$0xff]  ;;  %v686_v34 = vld [vmem:[%s1483_s10 + $0x18] sm:$0xff] }
   0xc   : > { %1230 = vset.pattern.permute.xlu0 %v1276_v0  ;;  %1231 = vset.pattern.permute.xlu1 %v1276_v0  ;;  %s1355_s23 = sshll.u32 %s1487_s22, 5  ;;  %s1212_s24 = sshll.u32 %s1487_s22, 4  ;;  %v1277_v19 = vmov 0.0   ;;  %vm700_vm5 = vcmask 1043456   ;;  %vm687_vm6 = vcmask 31744   ;;  %v683_v36 = vld [vmem:[%s1483_s10] sm:$0xff] }
   0xd   : > { %s529_s27 = scalar_lea.vmem %s1473_s0, %s1355_s23  ;;  %s557_s30 = scalar_lea.vmem %s1479_s6, %s1212_s24  ;;  %v1379_v17 = vand.u32 127, %v572_v16  ;;  %v684_v37 = vld [vmem:[%s1483_s10 + $0x8] sm:$0xff]  ;;  %vm737_vm8 = vcmask 261120   ;;  %v923_v16 = vld [vmem:[%s1484_s11 + $0x10] sm:$0xff] }
   0xe   : > { %v574_v1 = vld [vmem:[%s529_s27] sm:$0xff]  ;;  %v576_v2 = vld [vmem:[%s529_s27 + $0x10] sm:$0xff]  ;;  %s1169_s13 = sshll.u32 %s1487_s22, 2  ;;  %v654_v3 = vld [vmem:[%s557_s30 + $0x8] sm:$0xff]  ;;  %s1210_s17 = sshll.u32 %s1487_s22, 6  ;;  %vm927_vm13 = vcmp.gt.f32.partialorder %v923_v16, 0.5 }
   0xf   : > { %579 = vperm.xlu0 %1230, %v574_v1   ;;  %585 = vperm.xlu1 %1231, %v576_v2   ;;  %v653_v4 = vld [vmem:[%s557_s30] sm:$0xff]  ;;  %s542_s16 = scalar_lea.vmem %s1476_s3, %s1169_s13  ;;  %s547_s20 = scalar_lea.vmem %s1477_s4, %s1210_s17  ;;  %v575_v9 = vld [vmem:[%s529_s27 + $0x8] sm:$0xff]  ;;  %v577_v10 = vld [vmem:[%s529_s27 + $0x18] sm:$0xff] }
  0x10   : > { %677 = vmatpush.msra.mxu1 %v654_v3  ;;  %v652_v5 = vld [vmem:[%s542_s16] sm:$0xf]  ;;  %v609_v6 = vld [vmem:[%s547_s20 + $0x38] sm:$0xff]  ;;  %v608_v7 = vld [vmem:[%s547_s20 + $0x30] sm:$0xff]  ;;  %s560_s26 = scalar_lea.vmem %s1480_s7, %s1487_s22  ;;  %s552_s29 = scalar_lea.vmem %s1478_s5, %s1355_s23 }
  0x11   : > { %631 = vmatpush.msra.mxu0 %v609_v6  ;;  %v607_v8 = vld [vmem:[%s547_s20 + $0x28] sm:$0xff]  ;;  %v606_v11 = vld [vmem:[%s547_s20 + $0x20] sm:$0xff]  ;;  %v605_v12 = vld [vmem:[%s547_s20 + $0x18] sm:$0xff]  ;;  %s568_s14 = scalar_lea.vmem %s1482_s9, %s1487_s22  ;;  %s534_s28 = scalar_lea.vmem %s1474_s1, %s1355_s23 }
  0x12   : > { %678 = vmatpush.msra.mxu1 %v653_v4  ;;  %v604_v13 = vld [vmem:[%s547_s20 + $0x10] sm:$0xff]  ;;  %v603_v14 = vld [vmem:[%s547_s20 + $0x8] sm:$0xff]  ;;  %v602_v15 = vld [vmem:[%s547_s20] sm:$0xff]  ;;  %s571_s15 = scalar_lea.vmem %s1485_s12, %s1487_s22 }
  0x13   : > { %1187 = vmatmul.msk.f32.vlgmr.msra.gmra.mxu1 %vm659_vm0, %v652_v5  ;;  %632 = vmatpush.msra.mxu0 %v608_v7  ;;  %v1232_v24 = vld [vmem:[%s560_s26] ss:$0 sm:$0xff]  ;;  %v736_v29 = vld [vmem:[%s552_s29 + $0x18] sm:$0xff]  ;;  %v735_v30 = vld [vmem:[%s552_s29 + $0x10] sm:$0xff]  ;;  %s538_s26 = scalar_lea.vmem %s1475_s2, %s1169_s13 }
  0x14   : > { %v734_v32 = vld [vmem:[%s552_s29 + $0x8] sm:$0xff]  ;;  %v733_v33 = vld [vmem:[%s552_s29] sm:$0xff]  ;;  %s565_s29 = scalar_lea.vmem %s1481_s8, %s1355_s23 }
  0x15   : > { %633 = vmatpush.msra.mxu0 %v607_v8  ;;  %v832_v38 = vld [vmem:[%s538_s26] sm:$0xf]  ;;  %v786_v39 = vld [vmem:[%s565_s29 + $0x18] sm:$0xff]  ;;  %v785_v40 = vld [vmem:[%s565_s29 + $0x10] sm:$0xff] }
  0x16   : > { %815 = vmatpush.msrb.mxu1 %v786_v39  ;;  %v784_v45 = vld [vmem:[%s565_s29 + $0x8] sm:$0xff]  ;;  %v783_v46 = vld [vmem:[%s565_s29] sm:$0xff] }
  0x17   : > { %582 = vperm.xlu0 %1230, %v575_v9   ;;  %588 = vperm.xlu1 %1231, %v577_v10   ;;  %v1233_v0 = vld [vmem:[%s568_s14] ss:$0 sm:$0xff] }
  0x18   : > { %634 = vmatpush.msra.mxu0 %v606_v11  ;;  %816 = vmatpush.msrb.mxu1 %v785_v40  ;;  %v921_v10 = vld [vmem:[%s1484_s11] sm:$0xff] }
  0x19   : > { %vm925_vm11 = vcmp.gt.f32.partialorder %v921_v10, 0.5 }
  0x1a   : > { %635 = vmatpush.msra.mxu0 %v605_v12  ;;  %817 = vmatpush.msrb.mxu1 %v784_v45 }
  0x1c   : > { %636 = vmatpush.msra.mxu0 %v604_v13  ;;  %818 = vmatpush.msrb.mxu1 %v783_v46 }
  0x1e   : > { %637 = vmatpush.msra.mxu0 %v603_v14 }
  0x20   : > { %638 = vmatpush.msra.mxu0 %v602_v15 }
  0x81   : > { %v580_v18 = vpop.permute.xlu0 %579  ;;  %v586_v22 = vpop.permute.xlu1 %585 }
  0x82   : > { %vm590_vm2 = vcmp.eq.s32.totalorder %v580_v18, %v1379_v17  ;;  %vm592_vm4 = vcmp.eq.s32.totalorder %v586_v22, %v1379_v17 }
  0x83   : > { %v1179_v20 = vsel %vm590_vm2, 1.0, %v1277_v19  ;;  %v1181_v26 = vsel %vm592_vm4, 1.0, %v1277_v19 }
  0x84   : > { %1183 = vmatmul.msk.f32.vlgmr.msra.gmra.mxu0 %vm610_vm1, %v1179_v20 }
  0x89   : > { %v583_v21 = vpop.permute.xlu0 %582  ;;  %v589_v31 = vpop.permute.xlu1 %588 }
  0x8a   : > { %vm591_vm3 = vcmp.eq.s32.totalorder %v583_v21, %v1379_v17  ;;  %vm593_vm7 = vcmp.eq.s32.totalorder %v589_v31, %v1379_v17 }
  0x8b   : > { %v1180_v23 = vsel %vm591_vm3, 1.0, %v1277_v19  ;;  %v1182_v35 = vsel %vm593_vm7, 1.0, %v1277_v19  ;;  %vm1007_vm3 = vcmp.eq.s32.totalorder %v1379_v17, 0 }
  0x8c   : > { %1184 = vmatmul.msk.f32.gmra.mxu0 %vm610_vm1, %v1180_v23 }
  0x90   : > { %v680_v25 = vpop.f32.mrf.mxu1 }
  0x91   : > { %v681_v27 = vadd.f32 %v1232_v24, %v680_v25  ;;  %v924_v25 = vld [vmem:[%s1484_s11 + $0x18] sm:$0xff] }
  0x92   : > { %vm928_vm15 = vcmp.gt.f32.partialorder %v924_v25, 0.5 }
  0x93   : > { %1188 = vmatpush.msk.msra.mxu2 %vm700_vm5, %v681_v27  ;;  %1214 = vmatpush.msk.msra.mxu3 %vm700_vm5, %v681_v27 }
  0x94   : > { %1185 = vmatmul.msk.f32.gmra.mxu0 %vm610_vm1, %v1181_v26  ;;  %1191 = vmatmul.msk.f32.vlgmr.msra.gmra.mxu3 %vm687_vm6, %v685_v28 }
  0x95   : > { %762 = vmatpush.msrb.mxu3 %v736_v29  ;;  %1189 = vmatmul.msk.f32.vlgmr.msra.gmra.mxu2 %vm687_vm6, %v683_v36 }
  0x96   : > { %1201 = vmatpush.msk.msrb.mxu2 %vm700_vm5, %v832_v38 }
  0x97   : > { %763 = vmatpush.msrb.mxu3 %v735_v30 }
  0x99   : > { %764 = vmatpush.msrb.mxu3 %v734_v32 }
  0x9b   : > { %765 = vmatpush.msrb.mxu3 %v733_v33 }
  0x9c   : > { %1186 = vmatmul.msk.f32.gmra.mxu0 %vm610_vm1, %v1182_v35  ;;  %1192 = vmatmul.msk.f32.gmra.mxu3 %vm687_vm6, %v686_v34  ;;  %vm981_vm1 = vcmask 7168  }
  0x9d   : > { %1190 = vmatmul.msk.f32.gmra.mxu2 %vm687_vm6, %v684_v37 }
  0xa5   : > { %1202 = vmatmul.msk.f32.vlgmr.msrb.gmra.mxu2 %vm687_vm6, %v683_v36 }
  0xad   : > { %1203 = vmatmul.msk.f32.gmra.mxu2 %vm687_vm6, %v684_v37 }
  0xb5   : > { %1204 = vmatmul.msk.f32.gmra.mxu2 %vm687_vm6, %v685_v28 }
  0xbd   : > { %1205 = vmatmul.msk.f32.gmra.mxu2 %vm687_vm6, %v686_v34 }
 0x101   : > { %v640_v41 = vpop.f32.mrf.mxu0 }
 0x102   : > { %1193 = vmatmul.msk.f32.vlgmr.msrb.gmra.mxu3 %vm737_vm8, %v640_v41 }
 0x109   : > { %v643_v42 = vpop.f32.mrf.mxu0 }
 0x10a   : > { %1194 = vmatmul.msk.f32.gmra.mxu3 %vm737_vm8, %v643_v42 }
 0x111   : > { %v646_v43 = vpop.f32.mrf.mxu0 }
 0x112   : > { %1195 = vmatmul.msk.f32.gmra.mxu3 %vm737_vm8, %v646_v43 }
 0x117   : > { %v727_v47 = vpop.f32.mrf.mxu3 }
 0x118   : > { %v721_v49 = vpop.f32.mrf.mxu2 }
 0x119   : > { %v649_v44 = vpop.f32.mrf.mxu0 }
 0x11a   : > { %1196 = vmatmul.msk.f32.gmra.mxu3 %vm737_vm8, %v649_v44 }
 0x11f   : > { %v730_v48 = vpop.f32.mrf.mxu3 }
 0x120   : > { %v724_v53 = vpop.f32.mrf.mxu2 }
 0x128   : > { %v853_v63 = vpop.f32.mrf.mxu2 }
 0x129   : > { %vm865_vm9 = vcmp.gt.f32.partialorder %v853_v63, 0.5 }
 0x130   : > { %v856_v3 = vpop.f32.mrf.mxu2 }
 0x131   : > { %vm866_vm10 = vcmp.gt.f32.partialorder %v856_v3, 0.5 }
 0x138   : > { %v859_v9 = vpop.f32.mrf.mxu2 }
 0x139   : > { %vm867_vm12 = vcmp.gt.f32.partialorder %v859_v9, 0.5 }
 0x140   : > { %v862_v20 = vpop.f32.mrf.mxu2 }
 0x141   : > { %vm868_vm14 = vcmp.gt.f32.partialorder %v862_v20, 0.5 }
 0x185   : > { %v767_v50 = vpop.f32.mrf.mxu3 }
 0x186   : > { %v768_v51 = vadd.f32 %v767_v50, %v721_v49  ;;  %v922_v49 = vld [vmem:[%s1484_s11 + $0x8] sm:$0xff] }
 0x187   : > { %vm926_vm0 = vcmp.gt.f32.partialorder %v922_v49, 0.5 }
 0x188   : > { %v779_v52 = vmax.f32 %v768_v51, 0.0 }
 0x18a   : > { %1197 = vmatmul.msk.f32.vlgmr.msrb.gmra.mxu1 %vm737_vm8, %v779_v52 }
 0x18d   : > { %v770_v54 = vpop.f32.mrf.mxu3 }
 0x18e   : > { %v771_v55 = vadd.f32 %v770_v54, %v724_v53 }
 0x190   : > { %v780_v56 = vmax.f32 %v771_v55, 0.0 }
 0x192   : > { %1198 = vmatmul.msk.f32.gmra.mxu1 %vm737_vm8, %v780_v56 }
 0x195   : > { %v773_v57 = vpop.f32.mrf.mxu3 }
 0x196   : > { %v774_v58 = vadd.f32 %v773_v57, %v727_v47 }
 0x198   : > { %v781_v59 = vmax.f32 %v774_v58, 0.0 }
 0x19a   : > { %1199 = vmatmul.msk.f32.gmra.mxu1 %vm737_vm8, %v781_v59 }
 0x19d   : > { %v776_v60 = vpop.f32.mrf.mxu3 }
 0x19e   : > { %v777_v61 = vadd.f32 %v776_v60, %v730_v48 }
 0x1a0   : > { %v782_v62 = vmax.f32 %v777_v61, 0.0 }
 0x1a2   : > { %1200 = vmatmul.msk.f32.gmra.mxu1 %vm737_vm8, %v782_v62 }
 0x207   : > { %v820_v1 = vpop.f32.mrf.mxu1 }
 0x208   : > { %v821_v2 = vadd.f32 %v1233_v0, %v820_v1 }
 0x20a   : > { %v869_v4 = vsel %vm865_vm9, %v821_v2, -1e+30 }
 0x20b   : > { %v873_v5 = vsel %vm737_vm8, %v869_v4, -inf  ;;  %v929_v14 = vsel %vm925_vm11, %v869_v4, 0.0 }
 0x20c   : > { %874 = vmax.xlane.f32.xlu2 %v873_v5  ;;  %v933_v18 = vsel %vm737_vm8, %v929_v14, 0.0 }
 0x20f   : > { %v823_v6 = vpop.f32.mrf.mxu1 }
 0x210   : > { %v824_v7 = vadd.f32 %v1233_v0, %v823_v6 }
 0x212   : > { %v870_v8 = vsel %vm866_vm10, %v824_v7, -1e+30 }
 0x213   : > { %v876_v11 = vsel %vm737_vm8, %v870_v8, -inf  ;;  %v930_v51 = vsel %vm926_vm0, %v870_v8, 0.0 }
 0x214   : > { %877 = vmax.xlane.f32.xlu2 %v876_v11  ;;  %v936_v52 = vsel %vm737_vm8, %v930_v51, 0.0 }
 0x217   : > { %v826_v12 = vpop.f32.mrf.mxu1 }
 0x218   : > { %v827_v13 = vadd.f32 %v1233_v0, %v826_v12 }
 0x21a   : > { %v871_v15 = vsel %vm867_vm12, %v827_v13, -1e+30 }
 0x21b   : > { %v879_v19 = vsel %vm737_vm8, %v871_v15, -inf  ;;  %v931_v23 = vsel %vm927_vm13, %v871_v15, 0.0 }
 0x21c   : > { %934 = vadd.xlane.f32.xlu2 %v933_v18  ;;  %880 = vmax.xlane.f32.xlu0 %v879_v19  ;;  %v939_v26 = vsel %vm737_vm8, %v931_v23, 0.0 }
 0x21f   : > { %v829_v21 = vpop.f32.mrf.mxu1 }
 0x220   : > { %v830_v22 = vadd.f32 %v1233_v0, %v829_v21 }
 0x222   : > { %v872_v24 = vsel %vm868_vm14, %v830_v22, -1e+30 }
 0x223   : > { %v882_v27 = vsel %vm737_vm8, %v872_v24, -inf  ;;  %v932_v28 = vsel %vm928_vm15, %v872_v24, 0.0 }
 0x224   : > { %940 = vadd.xlane.f32.xlu0 %v939_v26  ;;  %883 = vmax.xlane.f32.xlu1 %v882_v27  ;;  %v942_v29 = vsel %vm737_vm8, %v932_v28, 0.0 }
 0x22c   : > { %943 = vadd.xlane.f32.xlu1 %v942_v29 }
 0x27f   : > { %v875_v30 = vpop.xlane.xlu2 %874 }
 0x280   : > { %v885_v31 = vsub.f32 %v869_v4, %v875_v30 }
 0x282   : > { %v889_v32 = vmul.f32 1.442695, %v885_v31 }
 0x284   : > { %1234 = vpow2.f32 %v889_v32  ;;  %v973_v32 = vld [vmem:[%s534_s28] sm:$0xff] }
 0x287   : > { %v878_v33 = vpop.xlane.xlu2 %877 }
 0x288   : > { %v886_v34 = vsub.f32 %v870_v8, %v878_v33 }
 0x28a   : > { %v1235_v35 = vpop.eup %1234  ;;  %v891_v36 = vmul.f32 1.442695, %v886_v34 }
 0x28b   : > { %v897_v37 = vsel %vm737_vm8, %v1235_v35, 0.0  ;;  %v974_v35 = vld [vmem:[%s534_s28 + $0x8] sm:$0xff] }
 0x28c   : > { %1236 = vpow2.f32 %v891_v36  ;;  %898 = vadd.xlane.f32.xlu2 %v897_v37  ;;  %v975_v36 = vld [vmem:[%s534_s28 + $0x10] sm:$0xff] }
 0x28f   : > { %v881_v38 = vpop.xlane.xlu0 %880  ;;  %v935_v53 = vpop.xlane.xlu2 %934 }
 0x290   : > { %v887_v39 = vsub.f32 %v871_v15, %v881_v38 }
 0x292   : > { %v1237_v40 = vpop.eup %1236  ;;  %v893_v41 = vmul.f32 1.442695, %v887_v39 }
 0x293   : > { %v900_v42 = vsel %vm737_vm8, %v1237_v40, 0.0 }
 0x294   : > { %1238 = vpow2.f32 %v893_v41  ;;  %901 = vadd.xlane.f32.xlu2 %v900_v42 }
 0x297   : > { %v884_v43 = vpop.xlane.xlu1 %883  ;;  %v941_v3 = vpop.xlane.xlu0 %940 }
 0x298   : > { %v888_v44 = vsub.f32 %v872_v24, %v884_v43 }
 0x29a   : > { %v1239_v45 = vpop.eup %1238  ;;  %v895_v46 = vmul.f32 1.442695, %v888_v44 }
 0x29b   : > { %v903_v47 = vsel %vm737_vm8, %v1239_v45, 0.0 }
 0x29c   : > { %1240 = vpow2.f32 %v895_v46  ;;  %904 = vadd.xlane.f32.xlu2 %v903_v47 }
 0x29f   : > { %v944_v16 = vpop.xlane.xlu1 %943 }
 0x2a2   : > { %v1241_v48 = vpop.eup %1240 }
 0x2a3   : > { %v906_v50 = vsel %vm737_vm8, %v1241_v48, 0.0 }
 0x2a4   : > { %907 = vadd.xlane.f32.xlu2 %v906_v50 }
 0x2ac   : > { %937 = vadd.xlane.f32.xlu2 %v936_v52 }
 0x2ff   : > { %v899_v54 = vpop.xlane.xlu2 %898 }
 0x300   : > { %1242 = vlog2.f32 %v899_v54 }
 0x306   : > { %v1243_v55 = vpop.eup %1242 }
 0x307   : > { %v902_v56 = vpop.xlane.xlu2 %901  ;;  %v910_v57 = vmul.f32 0.6931472, %v1243_v55 }
 0x309   : > { %v917_v58 = vadd.f32 %v910_v57, %v875_v30 }
 0x30b   : > { %v945_v60 = vsub.f32 %v935_v53, %v917_v58  ;;  %v1278_v53 = vmov 2.0  }
 0x30d   : > { %v949_v61 = vmul.f32 1.442695, %v945_v60 }
 0x30f   : > { %v905_v59 = vpop.xlane.xlu2 %904 }
 0x310   : > { %1244 = vlog2.f32 %v905_v59 }
 0x311   : > { %1246 = vlog2.f32 %v902_v56 }
 0x312   : > { %1248 = vpow2.f32 %v949_v61 }
 0x316   : > { %v1245_v62 = vpop.eup %1244 }
 0x317   : > { %v1247_v63 = vpop.eup %1246  ;;  %v914_v0 = vmul.f32 0.6931472, %v1245_v62  ;;  %v908_v1 = vpop.xlane.xlu2 %907 }
 0x318   : > { %1250 = vlog2.f32 %v908_v1  ;;  %v912_v4 = vmul.f32 0.6931472, %v1247_v63  ;;  %v1249_v7 = vpop.eup %1248 }
 0x319   : > { %v919_v2 = vadd.f32 %v914_v0, %v881_v38  ;;  %v957_v13 = vadd.f32 1e-08, %v1249_v7 }
 0x31a   : > { %v918_v8 = vadd.f32 %v912_v4, %v878_v33 }
 0x31b   : > { %v947_v5 = vsub.f32 %v941_v3, %v919_v2 }
 0x31d   : > { %v953_v6 = vmul.f32 1.442695, %v947_v5 }
 0x31e   : > { %v1251_v9 = vpop.eup %1250 }
 0x31f   : > { %1252 = vpow2.f32 %v953_v6  ;;  %v938_v10 = vpop.xlane.xlu2 %937  ;;  %v916_v11 = vmul.f32 0.6931472, %v1251_v9 }
 0x320   : > { %v946_v12 = vsub.f32 %v938_v10, %v918_v8 }
 0x321   : > { %v920_v14 = vadd.f32 %v916_v11, %v884_v43  ;;  %v976_v43 = vld [vmem:[%s534_s28 + $0x18] sm:$0xff] }
 0x322   : > { %v951_v15 = vmul.f32 1.442695, %v946_v12 }
 0x323   : > { %v948_v18 = vsub.f32 %v944_v16, %v920_v14 }
 0x324   : > { %1254 = vpow2.f32 %v951_v15 }
 0x325   : > { %v1253_v19 = vpop.eup %1252  ;;  %1256 = vlog2.f32 %v957_v13  ;;  %v955_v21 = vmul.f32 1.442695, %v948_v18 }
 0x326   : > { %v959_v20 = vadd.f32 1e-08, %v1253_v19 }
 0x328   : > { %1258 = vlog2.f32 %v959_v20 }
 0x329   : > { %1260 = vpow2.f32 %v955_v21 }
 0x32a   : > { %v1255_v22 = vpop.eup %1254 }
 0x32b   : > { %v1257_v23 = vpop.eup %1256  ;;  %v958_v24 = vadd.f32 1e-08, %v1255_v22 }
 0x32c   : > { %v962_v26 = vmul.f32 0.6931472, %v1257_v23 }
 0x32d   : > { %1262 = vlog2.f32 %v958_v24 }
 0x32e   : > { %v1259_v25 = vpop.eup %1258  ;;  %v969_v30 = vsub.f32 0.0, %v962_v26 }
 0x32f   : > { %v1261_v27 = vpop.eup %1260  ;;  %v966_v29 = vmul.f32 0.6931472, %v1259_v25 }
 0x330   : > { %v960_v28 = vadd.f32 1e-08, %v1261_v27  ;;  %v977_v38 = vmul.f32 %v973_v32, %v969_v30 }
 0x331   : > { %v971_v34 = vsub.f32 0.0, %v966_v29 }
 0x332   : > { %1264 = vlog2.f32 %v960_v28  ;;  %v982_v44 = vsel %vm981_vm1, %v977_v38, 0.0 }
 0x333   : > { %v1263_v31 = vpop.eup %1262  ;;  %v979_v41 = vmul.f32 %v975_v36, %v971_v34  ;;  %1266 = vrcp.f32 %v1278_v53 }
 0x334   : > { %v964_v33 = vmul.f32 0.6931472, %v1263_v31 }
 0x335   : > { %v985_v48 = vsel %vm981_vm1, %v979_v41, 0.0 }
 0x336   : > { %v970_v37 = vsub.f32 0.0, %v964_v33 }
 0x338   : > { %v1265_v39 = vpop.eup %1264  ;;  %v978_v40 = vmul.f32 %v974_v35, %v970_v37 }
 0x339   : > { %v968_v42 = vmul.f32 0.6931472, %v1265_v39  ;;  %v1267_v54 = vpop.eup %1266 }
 0x33a   : > { %v983_v45 = vsel %vm981_vm1, %v978_v40, 0.0  ;;  %v999_v55 = vmul.f32 2.0, %v1267_v54  ;;  %vm1003_vm2 = vweird.f32 %v1267_v54 }
 0x33b   : > { %v972_v46 = vsub.f32 0.0, %v968_v42  ;;  %v984_v47 = vadd.f32 %v983_v45, %v982_v44 }
 0x33c   : > { %v1000_v56 = vsub.f32 1.0, %v999_v55 }
 0x33d   : > { %v980_v49 = vmul.f32 %v976_v43, %v972_v46  ;;  %v986_v50 = vadd.f32 %v985_v48, %v984_v47 }
 0x33e   : > { %v1001_v60 = vmul.f32 %v1267_v54, %v1000_v56 }
 0x33f   : > { %v987_v51 = vsel %vm981_vm1, %v980_v49, 0.0 }
 0x340   : > { %v988_v52 = vadd.f32 %v987_v51, %v986_v50  ;;  %v1002_v63 = vadd.f32 %v1267_v54, %v1001_v60 }
 0x342   : > { %989 = vadd.xlane.f32.xlu2 %v988_v52  ;;  %v1004_v2 = vsel %vm1003_vm2, %v1267_v54, %v1002_v63 }
 0x3b5   : > { %v990_v57 = vpop.xlane.xlu2 %989 }
 0x3b6   : > { %v991_v58 = vrot.slane %v990_v57, 4 }
 0x3b8   : > { %v992_v59 = vadd.f32 %v991_v58, %v990_v57 }
 0x3ba   : > { %v993_v61 = vrot.slane %v992_v59, 2 }
 0x3bc   : > { %v994_v62 = vadd.f32 %v993_v61, %v992_v59 }
 0x3be   : > { %v995_v0 = vrot.slane %v994_v62, 1 }
 0x3c0   : > { %v996_v1 = vadd.f32 %v995_v0, %v994_v62 }
 0x3c2   : > { %1215 = vpush %v996_v1 }
 0x3c3   : > { %1217 = vpush %v1004_v2 }
 0x3f3   : > { %s1216_s23 = spop %1215 }
 0x3f4   : > { %s1218_s29 = spop %1217 }
 0x3f5   : > { %s1006_s13 = smul.f32 %s1218_s29, %s1216_s23 }
 0x3f7   : > { %v1008_v3 = vstv %s1006_s13 }
 0x3f8   : > { %v1009_v4 = vsel %vm1007_vm3, %v1008_v3, 0.0 }
 0x3f9   : > { %1010 = vst [vmem:[%s571_s15] sm:$0x1] %v1009_v4 }
 0x3fa PF: > { %s22_s21 = sadd.s32 1, %s1274_s21  }
 0x3fb   : > { %p19_p4 = scmp.ge.s32.totalorder %s22_s21, 4  }
 0x3fd   :  { %21 = sbr.rel (!%p19_p4) target bundleno = 1 (0x1), region = 125 }

// kernel: vgvae_forward.4
= control target key start
LH: loop header
LB: loop body
LE: loop exit
PB: predicated region body
PF: predicated region fallthrough
CT: control target
= control target key end

     0   :  { %s1356_s18 = smov 0   ;;  %s1633_s0 = inlined_call_operand.vmem [shape: s32[2,32,1], index: 0, kind: input, shape index: {}]   ;;  %s1634_s1 = inlined_call_operand.vmem [shape: f32[2,32,1], index: 1, kind: input, shape index: {}]   ;;  %s1635_s2 = inlined_call_operand.vmem [shape: s32[32,1], index: 2, kind: input, shape index: {}]   ;;  %s1636_s3 = inlined_call_operand.vmem [shape: f32[32,4], index: 3, kind: input, shape index: {}]   ;;  %s1637_s4 = inlined_call_operand.vmem [shape: f32[2,4,16], index: 4, kind: input, shape index: {}]   ;;  %s1638_s5 = inlined_call_operand.vmem [shape: f32[2,4,16], index: 5, kind: input, shape index: {}]   ;;  %s1639_s6 = inlined_call_operand.vmem [shape: f32[64,32], index: 6, kind: input, shape index: {}]   ;;  %s1640_s7 = inlined_call_operand.vmem [shape: f32[32,32], index: 7, kind: input, shape index: {}]   ;;  %s1641_s8 = inlined_call_operand.vmem [shape: f32[16,32], index: 8, kind: input, shape index: {}]   ;;  %s1642_s9 = inlined_call_operand.vmem [shape: f32[16,32], index: 9, kind: input, shape index: {}]   ;;  %s1643_s10 = inlined_call_operand.vmem [shape: f32[1,32], index: 10, kind: input, shape index: {}, may-alias: {10,12}]   ;;  %s1644_s11 = inlined_call_operand.vmem [shape: f32[32,32], index: 11, kind: input, shape index: {}]   ;;  %s1645_s12 = inlined_call_operand.vmem [shape: f32[1,32], index: 12, kind: input, shape index: {}, may-alias: {10,12}]   ;;  %s1646_s13 = inlined_call_operand.vmem [shape: f32[32,64], index: 13, kind: input, shape index: {}]   ;;  %s1647_s14 = inlined_call_operand.vmem [shape: f32[1,64], index: 14, kind: input, shape index: {}]   ;;  %s1648_s15 = inlined_call_operand.vmem [shape: f32[2,1,128], index: 15, kind: output, shape index: {}]  }
   0x1 LB: > { %s1176_s19 = sadd.s32 4294967295, %s1272_s18   ;;  %p1180_p0 = scmp.ge.s32.totalorder %s1272_s18, 1  ;;  %s1272_s18 = sphi %s1356_s18, %s25_s18  }
   0x2   : > { %p465_p1 = scmp.lt.s32.totalorder %s1272_s18, 3 }
   0x4   : > { %p466_p2 = pnand %p1180_p0, %p465_p1 }
   0x5   : > { %p524_p3 = scmp.lt.s32.totalorder (!%p466_p2), %s1176_s19, 1 }
   0x6   : > { %469 = sbr.rel (%p466_p2) target bundleno = 1270 (0x4f6), region = 80 }
   0xb   : > { %v630_v0 = vld [vmem:[%s1642_s9 + $0x8] sm:$0xff]  ;;  %v1274_v1 = vmov 0   ;;  %v629_v2 = vld [vmem:[%s1642_s9] sm:$0xff]  ;;  %v582_v3 = vld [vmem:[%s1639_s6 + $0x38] sm:$0xff]  ;;  %s1650_s19 = smov (!%p524_p3, %s1176_s19), 1  ;;  %vm631_vm0 = vcmask 130048   ;;  %v545_v19 = vlaneseq }
   0xc   : > { %1241 = vset.pattern.permute.xlu0 %v1274_v1  ;;  %1242 = vset.pattern.permute.xlu1 %v1274_v1  ;;  %v581_v4 = vld [vmem:[%s1639_s6 + $0x30] sm:$0xff]  ;;  %v627_v5 = vld [vmem:[%s1641_s8 + $0x8] sm:$0xff]  ;;  %s1216_s17 = sshll.u32 %s1650_s19, 5  ;;  %s1185_s20 = sshll.u32 %s1650_s19, 2  ;;  %v579_v7 = vld [vmem:[%s1639_s6 + $0x20] sm:$0xff]  ;;  %vm583_vm1 = vcmask 523264  }
   0xd   : > { %649 = vmatpush.msra.mxu2 %v630_v0  ;;  %604 = vmatpush.msra.mxu0 %v582_v3  ;;  %v580_v6 = vld [vmem:[%s1639_s6 + $0x28] sm:$0xff]  ;;  %s528_s23 = scalar_lea.vmem %s1633_s0, %s1216_s17  ;;  %s541_s28 = scalar_lea.vmem %s1638_s5, %s1185_s20  ;;  %v626_v10 = vld [vmem:[%s1641_s8] sm:$0xff]  ;;  %v578_v12 = vld [vmem:[%s1639_s6 + $0x18] sm:$0xff]  ;;  %v1417_v20 = vand.u32 127, %v545_v19  ;;  %v1275_v22 = vmov 0.0   ;;  %vm700_vm6 = vcmask 1043456  }
   0xe   : > { %v547_v8 = vld [vmem:[%s528_s23] sm:$0xff]  ;;  %v549_v9 = vld [vmem:[%s528_s23 + $0x10] sm:$0xff]  ;;  %s537_s27 = scalar_lea.vmem %s1637_s4, %s1185_s20  ;;  %v576_v14 = vld [vmem:[%s1639_s6 + $0x8] sm:$0xff]  ;;  %vm687_vm7 = vcmask 31744   ;;  %vm737_vm8 = vcmask 261120   ;;  %s533_s24 = scalar_lea.vmem %s1634_s1, %s1216_s17  ;;  %vm969_vm11 = vcmask 7168  }
   0xf   : > { %650 = vmatpush.msra.mxu2 %v629_v2  ;;  %605 = vmatpush.msra.mxu0 %v581_v4  ;;  %v628_v11 = vld [vmem:[%s541_s28] sm:$0xf]  ;;  %v577_v13 = vld [vmem:[%s1639_s6 + $0x10] sm:$0xff]  ;;  %v548_v15 = vld [vmem:[%s528_s23 + $0x8] sm:$0xff]  ;;  %s544_s28 = scalar_lea.vmem %s1648_s15, %s1650_s19 }
  0x10   : > { %552 = vperm.xlu0 %1241, %v547_v8   ;;  %558 = vperm.xlu1 %1242, %v549_v9   ;;  %v550_v16 = vld [vmem:[%s528_s23 + $0x18] sm:$0xff]  ;;  %v625_v17 = vld [vmem:[%s537_s27] sm:$0xf]  ;;  %v735_v37 = vld [vmem:[%s1640_s7 + $0x10] sm:$0xff] }
  0x11   : > { %672 = vmatpush.msrb.mxu2 %v627_v5  ;;  %606 = vmatpush.msra.mxu0 %v580_v6  ;;  %v575_v18 = vld [vmem:[%s1639_s6] sm:$0xff]  ;;  %v736_v36 = vld [vmem:[%s1640_s7 + $0x18] sm:$0xff]  ;;  %v734_v38 = vld [vmem:[%s1640_s7 + $0x8] sm:$0xff] }
  0x12   : > { %1195 = vmatmul.msk.f32.vlgmr.msra.gmra.mxu2 %vm631_vm0, %v628_v11  ;;  %v1243_v30 = vld [vmem:[%s1643_s10] ss:$0 sm:$0xff]  ;;  %v684_v40 = vld [vmem:[%s1636_s3 + $0x8] sm:$0xff]  ;;  %v685_v41 = vld [vmem:[%s1636_s3 + $0x10] sm:$0xff] }
  0x13   : > { %607 = vmatpush.msra.mxu0 %v579_v7  ;;  %673 = vmatpush.msrb.mxu2 %v626_v10  ;;  %v683_v35 = vld [vmem:[%s1636_s3] sm:$0xff]  ;;  %v686_v42 = vld [vmem:[%s1636_s3 + $0x18] sm:$0xff]  ;;  %v785_v45 = vld [vmem:[%s1644_s11 + $0x10] sm:$0xff] }
  0x14   : > { %v733_v39 = vld [vmem:[%s1640_s7] sm:$0xff]  ;;  %v786_v44 = vld [vmem:[%s1644_s11 + $0x18] sm:$0xff]  ;;  %v784_v49 = vld [vmem:[%s1644_s11 + $0x8] sm:$0xff] }
  0x15   : > { %608 = vmatpush.msra.mxu0 %v578_v12  ;;  %815 = vmatpush.msra.mxu2 %v786_v44  ;;  %v783_v50 = vld [vmem:[%s1644_s11] sm:$0xff]  ;;  %v835_v53 = vld [vmem:[%s1646_s13 + $0x18] sm:$0xff]  ;;  %v834_v54 = vld [vmem:[%s1646_s13 + $0x10] sm:$0xff] }
  0x16   : > { %v833_v55 = vld [vmem:[%s1646_s13 + $0x8] sm:$0xff]  ;;  %v832_v58 = vld [vmem:[%s1646_s13] sm:$0xff] }
  0x17   : > { %609 = vmatpush.msra.mxu0 %v577_v13  ;;  %816 = vmatpush.msra.mxu2 %v785_v45  ;;  %v1244_v7 = vld [vmem:[%s1645_s12] ss:$0 sm:$0xff] }
  0x18   : > { %555 = vperm.xlu0 %1241, %v548_v15   ;;  %561 = vperm.xlu1 %1242, %v550_v16   ;;  %v1245_v16 = vld [vmem:[%s1647_s14] ss:$0 sm:$0xff] }
  0x19   : > { %610 = vmatpush.msra.mxu0 %v576_v14  ;;  %817 = vmatpush.msra.mxu2 %v784_v49 }
  0x1a   : > { %1196 = vmatmul.msk.f32.vlgmr.msrb.gmra.mxu2 %vm631_vm0, %v625_v17 }
  0x1b   : > { %611 = vmatpush.msra.mxu0 %v575_v18  ;;  %818 = vmatpush.msra.mxu2 %v783_v50 }
  0x82   : > { %v553_v21 = vpop.permute.xlu0 %552  ;;  %v559_v25 = vpop.permute.xlu1 %558 }
  0x83   : > { %vm563_vm2 = vcmp.eq.s32.totalorder %v553_v21, %v1417_v20  ;;  %vm565_vm4 = vcmp.eq.s32.totalorder %v559_v25, %v1417_v20 }
  0x84   : > { %v1420_v23 = vsel %vm563_vm2, 1.0, %v1275_v22  ;;  %v1430_v27 = vsel %vm565_vm4, 1.0, %v1275_v22 }
  0x85   : > { %1191 = vmatmul.msk.f32.vlgmr.msra.gmra.mxu0 %vm583_vm1, %v1420_v23 }
  0x8a   : > { %v556_v24 = vpop.permute.xlu0 %555  ;;  %v562_v29 = vpop.permute.xlu1 %561 }
  0x8b   : > { %vm564_vm3 = vcmp.eq.s32.totalorder %v556_v24, %v1417_v20  ;;  %vm566_vm5 = vcmp.eq.s32.totalorder %v562_v29, %v1417_v20 }
  0x8c   : > { %v1425_v26 = vsel %vm564_vm3, 1.0, %v1275_v22  ;;  %v1438_v31 = vsel %vm566_vm5, 1.0, %v1275_v22 }
  0x8d   : > { %1192 = vmatmul.msk.f32.gmra.mxu0 %vm583_vm1, %v1425_v26 }
  0x95   : > { %v652_v28 = vpop.f32.mrf.mxu2  ;;  %1193 = vmatmul.msk.f32.gmra.mxu0 %vm583_vm1, %v1430_v27 }
  0x9d   : > { %v675_v32 = vpop.f32.mrf.mxu2  ;;  %1194 = vmatmul.msk.f32.gmra.mxu0 %vm583_vm1, %v1438_v31 }
  0x9e   : > { %v676_v33 = vadd.f32 %v675_v32, %v652_v28 }
  0xa0   : > { %v682_v34 = vadd.f32 %v1243_v30, %v676_v33 }
  0xa2   : > { %1197 = vmatpush.msk.msra.mxu1 %vm700_vm6, %v682_v34  ;;  %1218 = vmatpush.msk.msra.mxu3 %vm700_vm6, %v682_v34 }
  0xa3   : > { %1198 = vmatmul.msk.f32.vlgmr.msra.gmra.mxu1 %vm687_vm7, %v683_v35  ;;  %1200 = vmatmul.msk.f32.vlgmr.msra.gmra.mxu3 %vm687_vm7, %v685_v41 }
  0xa4   : > { %762 = vmatpush.msrb.mxu1 %v736_v36  ;;  %864 = vmatpush.msrb.mxu3 %v835_v53 }
  0xa6   : > { %763 = vmatpush.msrb.mxu1 %v735_v37  ;;  %865 = vmatpush.msrb.mxu3 %v834_v54 }
  0xa8   : > { %764 = vmatpush.msrb.mxu1 %v734_v38  ;;  %866 = vmatpush.msrb.mxu3 %v833_v55 }
  0xaa   : > { %765 = vmatpush.msrb.mxu1 %v733_v39  ;;  %867 = vmatpush.msrb.mxu3 %v832_v58 }
  0xab   : > { %1199 = vmatmul.msk.f32.gmra.mxu1 %vm687_vm7, %v684_v40  ;;  %1201 = vmatmul.msk.f32.gmra.mxu3 %vm687_vm7, %v686_v42 }
 0x102   : > { %v613_v43 = vpop.f32.mrf.mxu0 }
 0x103   : > { %1202 = vmatmul.msk.f32.vlgmr.msrb.gmra.mxu1 %vm737_vm8, %v613_v43 }
 0x10a   : > { %v616_v46 = vpop.f32.mrf.mxu0 }
 0x10b   : > { %1203 = vmatmul.msk.f32.gmra.mxu1 %vm737_vm8, %v616_v46 }
 0x112   : > { %v619_v47 = vpop.f32.mrf.mxu0 }
 0x113   : > { %1204 = vmatmul.msk.f32.gmra.mxu1 %vm737_vm8, %v619_v47 }
 0x11a   : > { %v622_v48 = vpop.f32.mrf.mxu0 }
 0x11b   : > { %1205 = vmatmul.msk.f32.gmra.mxu1 %vm737_vm8, %v622_v48 }
 0x120   : > { %v721_v51 = vpop.f32.mrf.mxu1 }
 0x126   : > { %v727_v63 = vpop.f32.mrf.mxu3 }
 0x128   : > { %v724_v52 = vpop.f32.mrf.mxu1 }
 0x12e   : > { %v730_v3 = vpop.f32.mrf.mxu3 }
 0x180   : > { %v767_v56 = vpop.f32.mrf.mxu1 }
 0x181   : > { %v768_v57 = vadd.f32 %v767_v56, %v721_v51 }
 0x183   : > { %v779_v59 = vmax.f32 %v768_v57, 0.0 }
 0x185   : > { %1206 = vmatmul.msk.f32.vlgmr.msra.gmra.mxu2 %vm737_vm8, %v779_v59 }
 0x188   : > { %v770_v60 = vpop.f32.mrf.mxu1 }
 0x189   : > { %v771_v61 = vadd.f32 %v770_v60, %v724_v52  ;;  %v953_v60 = vld [vmem:[%s1635_s2] sm:$0xff] }
 0x18a   : > { %vm957_vm10 = vcmp.eq.s32.totalorder %v953_v60, 0  ;;  %vm1027_vm14 = vcmp.eq.s32.totalorder %v953_v60, 1 }
 0x18b   : > { %v780_v62 = vmax.f32 %v771_v61, 0.0  ;;  %v1548_v61 = vld [vmem:[%s1635_s2 + $0x8] sm:$0xff] }
 0x18c   : > { %vm958_vm9 = vcmp.eq.s32.totalorder %v1548_v61, 0  ;;  %vm1028_vm15 = vcmp.eq.s32.totalorder %v1548_v61, 1 }
 0x18d   : > { %1207 = vmatmul.msk.f32.gmra.mxu2 %vm737_vm8, %v780_v62  ;;  %v949_v62 = vld [vmem:[%s533_s24] sm:$0xff] }
 0x190   : > { %v773_v0 = vpop.f32.mrf.mxu1 }
 0x191   : > { %v774_v1 = vadd.f32 %v773_v0, %v727_v63  ;;  %v1554_v63 = vld [vmem:[%s1635_s2 + $0x10] sm:$0xff] }
 0x192   : > { %vm959_vm12 = vcmp.eq.s32.totalorder %v1554_v63, 0  ;;  %vm1029_vm0 = vcmp.eq.s32.totalorder %v1554_v63, 1 }
 0x193   : > { %v781_v2 = vmax.f32 %v774_v1, 0.0  ;;  %v986_v1 = vsel %vm957_vm10, %v949_v62, 0.0 }
 0x195   : > { %1208 = vmatmul.msk.f32.gmra.mxu2 %vm737_vm8, %v781_v2 }
 0x198   : > { %v776_v4 = vpop.f32.mrf.mxu1 }
 0x199   : > { %v777_v5 = vadd.f32 %v776_v4, %v730_v3  ;;  %v1560_v3 = vld [vmem:[%s533_s24 + $0x10] sm:$0xff]  ;;  %v990_v4 = vsel %vm969_vm11, %v986_v1, 0.0 }
 0x19b   : > { %v782_v6 = vmax.f32 %v777_v5, 0.0 }
 0x19d   : > { %1209 = vmatmul.msk.f32.gmra.mxu2 %vm737_vm8, %v782_v6  ;;  %v1567_v6 = vld [vmem:[%s1635_s2 + $0x18] sm:$0xff] }
 0x19e   : > { %vm960_vm13 = vcmp.eq.s32.totalorder %v1567_v6, 0 }
 0x208   : > { %v820_v8 = vpop.f32.mrf.mxu2 }
 0x209   : > { %v821_v9 = vadd.f32 %v1244_v7, %v820_v8 }
 0x20b   : > { %1210 = vmatmul.msk.f32.vlgmr.msrb.gmra.mxu3 %vm737_vm8, %v821_v9  ;;  %v1572_v9 = vld [vmem:[%s533_s24 + $0x18] sm:$0xff] }
 0x210   : > { %v823_v10 = vpop.f32.mrf.mxu2 }
 0x211   : > { %v824_v11 = vadd.f32 %v1244_v7, %v823_v10 }
 0x213   : > { %1211 = vmatmul.msk.f32.gmra.mxu3 %vm737_vm8, %v824_v11  ;;  %v989_v11 = vsel %vm960_vm13, %v1572_v9, 0.0 }
 0x218   : > { %v826_v12 = vpop.f32.mrf.mxu2 }
 0x219   : > { %v827_v13 = vadd.f32 %v1244_v7, %v826_v12 }
 0x21b   : > { %1212 = vmatmul.msk.f32.gmra.mxu3 %vm737_vm8, %v827_v13  ;;  %v995_v13 = vsel %vm969_vm11, %v989_v11, 0.0 }
 0x220   : > { %v829_v14 = vpop.f32.mrf.mxu2 }
 0x221   : > { %v830_v15 = vadd.f32 %v1244_v7, %v829_v14  ;;  %v988_v7 = vsel %vm959_vm12, %v1560_v3, 0.0 }
 0x222   : > { %v993_v10 = vsel %vm969_vm11, %v988_v7, 0.0 }
 0x223   : > { %1213 = vmatmul.msk.f32.gmra.mxu3 %vm737_vm8, %v830_v15 }
 0x28e   : > { %v869_v17 = vpop.f32.mrf.mxu3 }
 0x28f   : > { %v870_v18 = vadd.f32 %v1245_v16, %v869_v17 }
 0x291   : > { %v881_v19 = vsel %vm583_vm1, %v870_v18, -inf  ;;  %v929_v25 = vmul.f32 %v1420_v23, %v870_v18 }
 0x292   : > { %882 = vmax.xlane.f32.xlu2 %v881_v19 }
 0x293   : > { %v933_v30 = vsel %vm583_vm1, %v929_v25, 0.0 }
 0x296   : > { %v872_v21 = vpop.f32.mrf.mxu3 }
 0x297   : > { %v873_v22 = vadd.f32 %v1245_v16, %v872_v21 }
 0x299   : > { %v884_v24 = vsel %vm583_vm1, %v873_v22, -inf  ;;  %v930_v57 = vmul.f32 %v1425_v26, %v873_v22  ;;  %v950_v26 = vld [vmem:[%s533_s24 + $0x8] sm:$0xff] }
 0x29a   : > { %885 = vmax.xlane.f32.xlu2 %v884_v24  ;;  %v987_v0 = vsel %vm958_vm9, %v950_v26, 0.0 }
 0x29b   : > { %v936_v58 = vsel %vm583_vm1, %v930_v57, 0.0  ;;  %v991_v5 = vsel %vm969_vm11, %v987_v0, 0.0 }
 0x29c   : > { %v992_v8 = vadd.f32 %v991_v5, %v990_v4 }
 0x29e   : > { %v875_v28 = vpop.f32.mrf.mxu3  ;;  %v994_v12 = vadd.f32 %v993_v10, %v992_v8 }
 0x29f   : > { %v876_v29 = vadd.f32 %v1245_v16, %v875_v28 }
 0x2a0   : > { %v996_v14 = vadd.f32 %v995_v13, %v994_v12 }
 0x2a1   : > { %v887_v32 = vsel %vm583_vm1, %v876_v29, -inf  ;;  %v931_v33 = vmul.f32 %v1430_v27, %v876_v29 }
 0x2a2   : > { %934 = vadd.xlane.f32.xlu2 %v933_v30  ;;  %888 = vmax.xlane.f32.xlu0 %v887_v32 }
 0x2a3   : > { %v939_v36 = vsel %vm583_vm1, %v931_v33, 0.0 }
 0x2a6   : > { %v878_v34 = vpop.f32.mrf.mxu3 }
 0x2a7   : > { %v879_v35 = vadd.f32 %v1245_v16, %v878_v34 }
 0x2a9   : > { %v890_v37 = vsel %vm583_vm1, %v879_v35, -inf  ;;  %v932_v23 = vmul.f32 %v1438_v31, %v879_v35 }
 0x2aa   : > { %940 = vadd.xlane.f32.xlu0 %v939_v36  ;;  %891 = vmax.xlane.f32.xlu1 %v890_v37 }
 0x2ab   : > { %v942_v38 = vsel %vm583_vm1, %v932_v23, 0.0  ;;  %v1052_v23 = vsel %vm1028_vm15, %v950_v26, 0.0 }
 0x2b2   : > { %943 = vadd.xlane.f32.xlu1 %v942_v38  ;;  %997 = vadd.xlane.f32.xlu0 %v996_v14 }
 0x305   : > { %v1522_v39 = vpop.xlane.xlu2 %882 }
 0x306   : > { %v893_v40 = vsub.f32 %v870_v18, %v1522_v39 }
 0x308   : > { %v897_v41 = vmul.f32 1.442695, %v893_v40 }
 0x30a   : > { %1246 = vpow2.f32 %v897_v41 }
 0x30d   : > { %v1525_v27 = vpop.xlane.xlu2 %885 }
 0x30e   : > { %v894_v42 = vsub.f32 %v873_v22, %v1525_v27 }
 0x310   : > { %v1247_v43 = vpop.eup %1246  ;;  %v899_v44 = vmul.f32 1.442695, %v894_v42  ;;  %v1051_v42 = vsel %vm1027_vm14, %v949_v62, 0.0 }
 0x311   : > { %v905_v45 = vsel %vm583_vm1, %v1247_v43, 0.0 }
 0x312   : > { %1248 = vpow2.f32 %v899_v44  ;;  %906 = vadd.xlane.f32.xlu2 %v905_v45 }
 0x315   : > { %v889_v31 = vpop.xlane.xlu0 %888  ;;  %v935_v59 = vpop.xlane.xlu2 %934 }
 0x316   : > { %v895_v46 = vsub.f32 %v876_v29, %v889_v31 }
 0x318   : > { %v1249_v47 = vpop.eup %1248  ;;  %v901_v48 = vmul.f32 1.442695, %v895_v46 }
 0x319   : > { %v908_v49 = vsel %vm583_vm1, %v1249_v47, 0.0  ;;  %v1055_v47 = vsel %vm969_vm11, %v1051_v42, 0.0 }
 0x31a   : > { %1250 = vpow2.f32 %v901_v48  ;;  %909 = vadd.xlane.f32.xlu2 %v908_v49  ;;  %v1056_v48 = vsel %vm969_vm11, %v1052_v23, 0.0 }
 0x31b   : > { %v1057_v60 = vadd.f32 %v1056_v48, %v1055_v47 }
 0x31d   : > { %v1530_v50 = vpop.xlane.xlu1 %891  ;;  %v941_v32 = vpop.xlane.xlu0 %940 }
 0x31e   : > { %v896_v51 = vsub.f32 %v879_v35, %v1530_v50 }
 0x320   : > { %v1251_v52 = vpop.eup %1250  ;;  %v903_v53 = vmul.f32 1.442695, %v896_v51 }
 0x321   : > { %v911_v54 = vsel %vm583_vm1, %v1251_v52, 0.0 }
 0x322   : > { %1252 = vpow2.f32 %v903_v53  ;;  %912 = vadd.xlane.f32.xlu2 %v911_v54 }
 0x325   : > { %v944_v44 = vpop.xlane.xlu1 %943  ;;  %v998_v13 = vpop.xlane.xlu0 %997 }
 0x326   : > { %v999_v14 = vrot.slane %v998_v13, 4 }
 0x328   : > { %v1253_v55 = vpop.eup %1252 }
 0x329   : > { %v914_v56 = vsel %vm583_vm1, %v1253_v55, 0.0  ;;  %vm1030_vm1 = vcmp.eq.s32.totalorder %v1567_v6, 1 }
 0x32a   : > { %915 = vadd.xlane.f32.xlu2 %v914_v56  ;;  %v1054_v8 = vsel %vm1030_vm1, %v1572_v9, 0.0 }
 0x32b   : > { %v1060_v11 = vsel %vm969_vm11, %v1054_v8, 0.0 }
 0x332   : > { %937 = vadd.xlane.f32.xlu2 %v936_v58 }
 0x385   : > { %v907_v2 = vpop.xlane.xlu2 %906 }
 0x386   : > { %1254 = vlog2.f32 %v907_v2 }
 0x38c   : > { %v1255_v16 = vpop.eup %1254 }
 0x38d   : > { %v910_v15 = vpop.xlane.xlu2 %909  ;;  %v918_v18 = vmul.f32 0.6931472, %v1255_v16 }
 0x38f   : > { %v925_v19 = vadd.f32 %v918_v18, %v1522_v39 }
 0x391   : > { %v945_v28 = vsub.f32 %v925_v19, %v935_v59  ;;  %v1053_v59 = vsel %vm1029_vm0, %v1560_v3, 0.0 }
 0x392   : > { %v1058_v63 = vsel %vm969_vm11, %v1053_v59, 0.0 }
 0x393   : > { %v961_v33 = vmul.f32 %v949_v62, %v945_v28  ;;  %v1059_v10 = vadd.f32 %v1058_v63, %v1057_v60 }
 0x395   : > { %v913_v17 = vpop.xlane.xlu2 %912  ;;  %v1031_v41 = vsel %vm1027_vm14, %v961_v33, 0.0  ;;  %v1061_v12 = vadd.f32 %v1060_v11, %v1059_v10 }
 0x396   : > { %1256 = vlog2.f32 %v913_v17  ;;  %v1035_v46 = vsel %vm969_vm11, %v1031_v41, 0.0 }
 0x397   : > { %1258 = vlog2.f32 %v910_v15  ;;  %v1000_v15 = vadd.f32 %v999_v14, %v998_v13 }
 0x399   : > { %v1001_v16 = vrot.slane %v1000_v15, 2 }
 0x39c   : > { %v1257_v21 = vpop.eup %1256 }
 0x39d   : > { %v1259_v22 = vpop.eup %1258  ;;  %v922_v24 = vmul.f32 0.6931472, %v1257_v21  ;;  %v916_v25 = vpop.xlane.xlu2 %915  ;;  %v1002_v21 = vadd.f32 %v1001_v16, %v1000_v15 }
 0x39e   : > { %1260 = vlog2.f32 %v916_v25  ;;  %v920_v30 = vmul.f32 0.6931472, %v1259_v22 }
 0x39f   : > { %v927_v29 = vadd.f32 %v922_v24, %v889_v31  ;;  %v1003_v25 = vrot.slane %v1002_v21, 1 }
 0x3a0   : > { %v926_v36 = vadd.f32 %v920_v30, %v1525_v27  ;;  %v965_v27 = vsel %vm957_vm10, %v961_v33, 0.0  ;;  %vm1006_vm10 = vcmp.eq.s32.totalorder %v1417_v20, 0 }
 0x3a1   : > { %v947_v34 = vsub.f32 %v927_v29, %v941_v32  ;;  %v970_v56 = vsel %vm969_vm11, %v965_v27, 0.0  ;;  %v1004_v28 = vadd.f32 %v1003_v25, %v1002_v21 }
 0x3a3   : > { %v963_v40 = vmul.f32 %v1560_v3, %v947_v34 }
 0x3a4   : > { %v1261_v35 = vpop.eup %1260 }
 0x3a5   : > { %v924_v37 = vmul.f32 0.6931472, %v1261_v35  ;;  %v938_v38 = vpop.xlane.xlu2 %937  ;;  %v1033_v51 = vsel %vm1029_vm0, %v963_v40, 0.0  ;;  %v967_v52 = vsel %vm959_vm12, %v963_v40, 0.0 }
 0x3a6   : > { %v946_v39 = vsub.f32 %v926_v36, %v938_v38  ;;  %v1038_v62 = vsel %vm969_vm11, %v1033_v51, 0.0  ;;  %v973_v0 = vsel %vm969_vm11, %v967_v52, 0.0 }
 0x3a7   : > { %v928_v43 = vadd.f32 %v924_v37, %v1530_v50 }
 0x3a8   : > { %v962_v45 = vmul.f32 %v950_v26, %v946_v39 }
 0x3a9   : > { %v948_v31 = vsub.f32 %v928_v43, %v944_v44 }
 0x3aa   : > { %v966_v49 = vsel %vm958_vm9, %v962_v45, 0.0  ;;  %v1032_v50 = vsel %vm1028_vm15, %v962_v45, 0.0 }
 0x3ab   : > { %v971_v53 = vsel %vm969_vm11, %v966_v49, 0.0  ;;  %v1036_v54 = vsel %vm969_vm11, %v1032_v50, 0.0  ;;  %v964_v55 = vmul.f32 %v1572_v9, %v948_v31 }
 0x3ac   : > { %v1037_v57 = vadd.f32 %v1036_v54, %v1035_v46  ;;  %v972_v58 = vadd.f32 %v971_v53, %v970_v56 }
 0x3ad   : > { %v1034_v61 = vsel %vm1030_vm1, %v964_v55, 0.0  ;;  %v968_v26 = vsel %vm960_vm13, %v964_v55, 0.0 }
 0x3ae   : > { %v1039_v1 = vadd.f32 %v1038_v62, %v1037_v57  ;;  %v1040_v2 = vsel %vm969_vm11, %v1034_v61, 0.0  ;;  %v974_v4 = vadd.f32 %v973_v0, %v972_v58  ;;  %v975_v5 = vsel %vm969_vm11, %v968_v26, 0.0 }
 0x3af   : > { %vm1071_vm11 = vcmp.eq.s32.totalorder %v1417_v20, 1 }
 0x3b0   : > { %v1041_v3 = vadd.f32 %v1040_v2, %v1039_v1  ;;  %v976_v7 = vadd.f32 %v975_v5, %v974_v4 }
 0x3b2   : > { %1042 = vadd.xlane.f32.xlu1 %v1041_v3  ;;  %977 = vadd.xlane.f32.xlu2 %v976_v7 }
 0x3ba   : > { %1062 = vadd.xlane.f32.xlu2 %v1061_v12 }
 0x425   : > { %v978_v17 = vpop.xlane.xlu2 %977  ;;  %v1043_v29 = vpop.xlane.xlu1 %1042 }
 0x426   : > { %v979_v18 = vrot.slane %v978_v17, 4  ;;  %v1044_v32 = vrot.slane %v1043_v29, 4 }
 0x428   : > { %v980_v19 = vadd.f32 %v979_v18, %v978_v17  ;;  %v1045_v35 = vadd.f32 %v1044_v32, %v1043_v29 }
 0x42a   : > { %v981_v22 = vrot.slane %v980_v19, 2  ;;  %v1046_v37 = vrot.slane %v1045_v35, 2 }
 0x42c   : > { %v982_v24 = vadd.f32 %v981_v22, %v980_v19  ;;  %v1047_v40 = vadd.f32 %v1046_v37, %v1045_v35 }
 0x42d   : > { %v1063_v30 = vpop.xlane.xlu2 %1062 }
 0x42e   : > { %v983_v6 = vrot.slane %v982_v24, 1  ;;  %v1064_v33 = vrot.slane %v1063_v30, 4  ;;  %v1048_v27 = vrot.slane %v1047_v40, 1 }
 0x430   : > { %v984_v9 = vadd.f32 %v983_v6, %v982_v24  ;;  %v1065_v36 = vadd.f32 %v1064_v33, %v1063_v30  ;;  %v1049_v50 = vadd.f32 %v1048_v27, %v1047_v40 }
 0x432   : > { %1219 = vpush %v984_v9  ;;  %v1066_v23 = vrot.slane %v1065_v36, 2 }
 0x433   : > { %1221 = vpush %v1004_v28 }
 0x434   : > { %v1067_v42 = vadd.f32 %v1066_v23, %v1065_v36 }
 0x436   : > { %v1068_v46 = vrot.slane %v1067_v42, 1 }
 0x438   : > { %v1069_v51 = vadd.f32 %v1068_v46, %v1067_v42 }
 0x463   : > { %s1621_s20 = spop %1219 }
 0x464   : > { %s1222_s23 = spop %1221 }
 0x465   : > { %v1007_v34 = vstv %s1222_s23 }
 0x466   : > { %1262 = vrcp.f32 %v1007_v34  ;;  %v1019_v43 = vand.u32 2147483648, %v1007_v34  ;;  %v1017_v45 = vand.u32 2147483647, %v1007_v34  ;;  %vm1013_vm3 = vweird.f32 %v1007_v34 }
 0x468   : > { %v1020_v47 = vor.u32 1.1754944e-38, %v1019_v43  ;;  %vm1018_vm5 = vcmp.eq.f32.partialorder %v1017_v45, 8.507059e+37 }
 0x46c   : > { %v1263_v38 = vpop.eup %1262 }
 0x46d   : > { %v1009_v39 = vmul.f32 %v1263_v38, %v1007_v34  ;;  %vm1014_vm2 = vweird.f32 %v1263_v38 }
 0x46e   : > { %vm1015_vm4 = vmor %vm1013_vm3, %vm1014_vm2 }
 0x46f   : > { %v1010_v41 = vsub.f32 1.0, %v1009_v39 }
 0x471   : > { %v1011_v44 = vmul.f32 %v1263_v38, %v1010_v41 }
 0x473   : > { %v1012_v31 = vadd.f32 %v1263_v38, %v1011_v44 }
 0x475   : > { %v1016_v48 = vsel %vm1015_vm4, %v1263_v38, %v1012_v31 }
 0x476   : > { %v1021_v49 = vsel %vm1018_vm5, %v1020_v47, %v1016_v48 }
 0x477   : > { %1223 = vpush %v1021_v49 }
 0x478   : > { %1225 = vpush %v1049_v50 }
 0x479   : > { %1227 = vpush %v1069_v51 }
 0x4a8   : > { %s1224_s21 = spop %1223 }
 0x4a9   : > { %s1226_s22 = spop %1225  ;;  %s1023_s25 = smul.f32 %s1224_s21, %s1621_s20 }
 0x4aa   : > { %s1228_s24 = spop %1227 }
 0x4ab   : > { %v1072_v52 = vstv %s1228_s24  ;;  %v1024_v26 = vstv %s1023_s25 }
 0x4ac   : > { %1264 = vrcp.f32 %v1072_v52  ;;  %v1084_v56 = vand.u32 2147483648, %v1072_v52  ;;  %v1082_v58 = vand.u32 2147483647, %v1072_v52  ;;  %vm1078_vm7 = vweird.f32 %v1072_v52 }
 0x4ad   : > { %v1025_v1 = vsel %vm1006_vm10, %v1024_v26, 0.0 }
 0x4ae   : > { %v1085_v60 = vor.u32 1.1754944e-38, %v1084_v56  ;;  %vm1083_vm9 = vcmp.eq.f32.partialorder %v1082_v58, 8.507059e+37 }
 0x4b2   : > { %v1265_v53 = vpop.eup %1264 }
 0x4b3   : > { %v1074_v54 = vmul.f32 %v1265_v53, %v1072_v52  ;;  %vm1079_vm6 = vweird.f32 %v1265_v53 }
 0x4b4   : > { %vm1080_vm8 = vmor %vm1078_vm7, %vm1079_vm6 }
 0x4b5   : > { %v1075_v55 = vsub.f32 1.0, %v1074_v54 }
 0x4b7   : > { %v1076_v57 = vmul.f32 %v1265_v53, %v1075_v55 }
 0x4b9   : > { %v1077_v59 = vadd.f32 %v1265_v53, %v1076_v57 }
 0x4bb   : > { %v1081_v61 = vsel %vm1080_vm8, %v1265_v53, %v1077_v59 }
 0x4bc   : > { %v1086_v62 = vsel %vm1083_vm9, %v1085_v60, %v1081_v61 }
 0x4bd   : > { %1229 = vpush %v1086_v62 }
 0x4ee   : > { %s1230_s26 = spop %1229 }
 0x4ef   : > { %s1088_s27 = smul.f32 %s1230_s26, %s1226_s22 }
 0x4f1   : > { %v1089_v0 = vstv %s1088_s27 }
 0x4f2   : > { %v1090_v2 = vsel %vm1071_vm11, %v1089_v0, 0.0 }
 0x4f3   : > { %v1091_v4 = vadd.f32 %v1090_v2, %v1025_v1 }
 0x4f5   : > { %1092 = vst [vmem:[%s544_s28] sm:$0x1] %v1091_v4 }
 0x4f6 PF: > { %s25_s18 = sadd.s32 1, %s1272_s18  }
 0x4f7   : > { %p22_p4 = scmp.ge.s32.totalorder %s25_s18, 4  }
 0x4f9   :  { %24 = sbr.rel (!%p22_p4) target bundleno = 1 (0x1), region = 119 }

</bundles_post_ra>
